<compile_context>
chip_gen: v7x
topology: tpu7x:2x2x1
jax: 0.10.0
libtpu: 0.0.40
codegen_flags: <defaults>
</compile_context>

<pallas_src>
import numpy as np

import jax
import jax.numpy as jnp
from jax import lax
from jax.experimental import pallas as pl
from jax.experimental.pallas import tpu as pltpu

ALPHA = 0.2      # disc_LReLU_alpha
EPS = 1e-5       # nn.InstanceNorm2d default eps
K = 4            # conv kernel_size
STRIDE = 2
PAD = 1


# ----------------------------- kernel helpers ------------------------------

def _leaky(x):
    return jnp.where(x >= 0, x, ALPHA * x)


def _f32dot(a, b):
    return jnp.dot(a, b, preferred_element_type=jnp.float32)


def _conv_gather_sum(g_ref, u, cout):
    # Conv2d(stride=2, pad=1) finishing stage:
    #   u[r, k*Cout+co] = sum_ci h[r, ci] * W[k, ci, co]   (already computed, wide matmul)
    #   z[o, co]        = sum_k  u[row(k, o), k*Cout+co]   (0/1 per-kpos spatial gathers)
    # g_ref: (k*k, HoWo, HiWi) per-sample (batch-independent) gather matrices.
    kk = g_ref.shape[0]
    acc = None
    for k in range(kk):
        t = _f32dot(g_ref[k], u[:, k * cout:(k + 1) * cout])
        acc = t if acc is None else acc + t
    return acc


def _cin_lrelu(z, y_row, a_mat):
    # InstanceNorm2d(affine=False) + conditional affine (nn.Linear(P, 2C)) + LeakyReLU,
    # fused into one per-channel FMA.  Stats at (1, C) granularity via a single matmul
    # against the lane-concatenated [z | z*z]; variance = E[z^2] - E[z]^2 (biased, as in
    # PyTorch InstanceNorm2d).
    hw, c = z.shape
    st = _f32dot(jnp.full((1, hw), 1.0 / hw, jnp.float32),
                 jnp.concatenate([z, z * z], axis=-1))          # (1, 2C) = [E[z] | E[z^2]]
    mean, ex2 = st[:, :c], st[:, c:]
    var = ex2 - mean * mean
    gb = _f32dot(y_row, a_mat)                                  # (1, 2C) = [gamma | beta]
    gamma, beta = gb[:, :c], gb[:, c:]
    scale = gamma * lax.rsqrt(var + EPS)
    shift = beta - mean * scale
    return _leaky(z * scale + shift)                            # (1,C) broadcast over rows


# ------------------------------ fused kernel --------------------------------

def _disc_kernel(p1_ref, y_ref, w1_ref, w2_ref, g2_ref, w3_ref, g3_ref, slab_ref, o_ref):
    kk = g2_ref.shape[0]
    paug = y_ref.shape[-1]                 # num_params + 1 (ones column appended)
    c2 = w2_ref.shape[1] // kk
    c3 = w3_ref.shape[1] // kk
    hw3 = g3_ref.shape[1]

    y_row = y_ref[0]                                           # (1, P+1)

    # Layer 1: Conv2d (im2col matmul, bias via augmented ones column) + LeakyReLU
    h1 = _leaky(_f32dot(p1_ref[0], w1_ref[...]))               # (HW1, C1)

    # Layer 2: Conv2d + ConditionalInstanceNorm2d + LeakyReLU
    # (conv bias omitted: exactly cancelled by the InstanceNorm mean subtraction)
    u2 = _f32dot(h1, w2_ref[...])                              # (HW1, k*k*C2) wide matmul
    z2 = _conv_gather_sum(g2_ref, u2, c2)                      # (HW2, C2)
    h2 = _cin_lrelu(z2, y_row, slab_ref[0:paug, 0:2 * c2])

    # Layer 3: Conv2d + ConditionalInstanceNorm2d + LeakyReLU
    u3 = _f32dot(h2, w3_ref[...])                              # (HW2, k*k*C3)
    z3 = _conv_gather_sum(g3_ref, u3, c3)                      # (HW3, C3)
    h3 = _cin_lrelu(z3, y_row, slab_ref[paug:2 * paug, 0:2 * c3])

    # Flatten (PyTorch (c,h,w) order folded into the WL layout) + Linear(C3*HW3 -> 1)
    wl = slab_ref[2 * paug:2 * paug + hw3, 0:c3]               # (HW3, C3)
    bl = slab_ref[2 * paug + hw3:2 * paug + hw3 + 1, 0:1]      # (1, 1)
    t = h3 * wl
    rs = _f32dot(jnp.full((1, hw3), 1.0, jnp.float32), t)      # spatial sum -> (1, C3)
    out = _f32dot(rs, jnp.full((c3, 1), 1.0, jnp.float32))     # channel sum -> (1, 1)
    o_ref[0] = out + bl


# ------------------------- host-side constant builders -----------------------

def _out_size(s):
    return (s + 2 * PAD - K) // STRIDE + 1


def _build_gather_per_sample(hi, wi, ho, wo):
    # Per-kernel-position 0/1 spatial gathers for ONE sample (batch independent).
    g = np.zeros((K * K, ho * wo, hi * wi), np.float32)
    for i in range(K):
        for j in range(K):
            kpos = i * K + j
            for oi in range(ho):
                si = oi * STRIDE + i - PAD
                if not 0 <= si < hi:
                    continue
                for oj in range(wo):
                    sj = oj * STRIDE + j - PAD
                    if not 0 <= sj < wi:
                        continue
                    g[kpos, oi * wo + oj, si * wi + sj] = 1.0
    return g


def _im2col_batched(x):
    # Layer-1 im2col (XLA prep, fused under jit).  Column order is Cin-major,
    # (ki,kj)-minor, matching PyTorch weight.reshape(Cout, Cin*k*k).
    n, c, h, w = x.shape
    ho, wo = _out_size(h), _out_size(w)
    xp = jnp.pad(x, ((0, 0), (0, 0), (PAD, PAD), (PAD, PAD)))
    cols = []
    for i in range(K):
        for j in range(K):
            cols.append(xp[:, :, i:i + STRIDE * ho:STRIDE, j:j + STRIDE * wo:STRIDE])
    p = jnp.stack(cols, axis=2)                                  # (N, C, k*k, Ho, Wo)
    p = p.reshape(n, c * K * K, ho * wo).transpose(0, 2, 1)      # (N, Ho*Wo, C*k*k)
    return p, ho, wo


# --------------------------------- forward ----------------------------------

@jax.jit
def discriminator_forward(params, x, y):
    n, cin, _, _ = x.shape
    c1 = params["w1"].shape[0]
    c2 = params["w2"].shape[0]
    c3 = params["w3"].shape[0]
    p_dim = y.shape[1]
    paug = p_dim + 1

    p1, h1s, w1s = _im2col_batched(x)                            # (N, HW1, cin*k*k)
    h2s, w2s = _out_size(h1s), _out_size(w1s)
    h3s, w3s = _out_size(h2s), _out_size(w2s)
    hw1, hw2, hw3 = h1s * w1s, h2s * w2s, h3s * w3s

    # Per-sample inputs: im2col patches with a ones column (folds the layer-1 bias),
    # conditioning vector augmented with 1 (folds the affine Linear bias).
    p1aug = jnp.concatenate([p1, jnp.ones((n, hw1, 1), jnp.float32)], axis=-1)
    y1 = jnp.concatenate([y, jnp.ones((n, 1), jnp.float32)], axis=-1).reshape(n, 1, paug)

    # Weight re-layouts (fused XLA prep under jit).
    w1aug = jnp.concatenate([params["w1"].reshape(c1, cin * K * K).T,
                             params["b1"].reshape(1, c1)], axis=0)          # (cin*k*k+1, C1)
    w2wide = params["w2"].transpose(1, 2, 3, 0).reshape(c1, K * K * c2)     # (C1, k*k*C2)
    w3wide = params["w3"].transpose(1, 2, 3, 0).reshape(c2, K * K * c3)     # (C2, k*k*C3)
    # b2/b3 intentionally unused: InstanceNorm(affine=False) cancels them exactly.

    # Per-sample (batch independent) gather matrices — compile-time constants.
    g2 = jnp.asarray(_build_gather_per_sample(h1s, w1s, h2s, w2s))          # (16, HW2, HW1)
    g3 = jnp.asarray(_build_gather_per_sample(h2s, w2s, h3s, w3s))          # (16, HW3, HW2)

    # Packed constant slab: conditional-affine matrices (Linear(P,2C) as [W^T; b]),
    # the permuted final Linear weight, and its bias -> one DMA instead of many.
    a2 = jnp.concatenate([params["a2_w"].T, params["a2_b"].reshape(1, 2 * c2)], axis=0)
    a3 = jnp.concatenate([params["a3_w"].T, params["a3_b"].reshape(1, 2 * c3)], axis=0)
    wlp = params["wl"].reshape(c3, h3s, w3s).transpose(1, 2, 0).reshape(hw3, c3)
    slab_rows = 2 * paug + hw3 + 1
    slab_cols = max(2 * c2, 2 * c3, c3)
    slab = jnp.zeros((slab_rows, slab_cols), jnp.float32)
    slab = slab.at[0:paug, 0:2 * c2].set(a2)
    slab = slab.at[paug:2 * paug, 0:2 * c3].set(a3)
    slab = slab.at[2 * paug:2 * paug + hw3, 0:c3].set(wlp)
    slab = slab.at[2 * paug + hw3, 0].set(params["bl"][0])

    flops = 2 * n * (hw1 * (cin * K * K + 1) * c1
                     + hw1 * c1 * K * K * c2 + K * K * hw2 * hw1 * c2
                     + hw2 * c2 * K * K * c3 + K * K * hw3 * hw2 * c3
                     + 2 * hw3 * c3)
    bytes_accessed = 4 * (p1aug.size + y1.size + w1aug.size + w2wide.size + g2.size
                          + w3wide.size + g3.size + slab.size + n)

    out = pl.pallas_call(
        _disc_kernel,
        out_shape=jax.ShapeDtypeStruct((n, 1, 1), jnp.float32),
        grid=(n,),
        in_specs=[
            pl.BlockSpec((1, hw1, cin * K * K + 1), lambda b: (b, 0, 0)),   # p1aug
            pl.BlockSpec((1, 1, paug), lambda b: (b, 0, 0)),                # y1
            pl.BlockSpec((cin * K * K + 1, c1), lambda b: (0, 0)),          # w1aug
            pl.BlockSpec((c1, K * K * c2), lambda b: (0, 0)),               # w2wide
            pl.BlockSpec((K * K, hw2, hw1), lambda b: (0, 0, 0)),           # g2
            pl.BlockSpec((c2, K * K * c3), lambda b: (0, 0)),               # w3wide
            pl.BlockSpec((K * K, hw3, hw2), lambda b: (0, 0, 0)),           # g3
            pl.BlockSpec((slab_rows, slab_cols), lambda b: (0, 0)),         # packed consts
        ],
        out_specs=pl.BlockSpec((1, 1, 1), lambda b: (b, 0, 0)),
        compiler_params=pltpu.CompilerParams(
            dimension_semantics=("parallel",),
            vmem_limit_bytes=32 * 1024 * 1024),
        cost_estimate=pl.CostEstimate(flops=flops,
                                      transcendentals=n * (c2 + c3),
                                      bytes_accessed=int(bytes_accessed)),
    )(p1aug, y1, w1aug, w2wide, g2, w3wide, g3, slab)
    return out.reshape(n, 1)


# ----------------------------------- main ------------------------------------

if __name__ == "__main__":
    key = jax.random.PRNGKey(0)
    ks = jax.random.split(key, 12)

    N, Cin, H, W = 2, 3, 16, 16
    P = 4  # num_params (conditioning vector length)

    params = {
        # Conv2d weights (Cout, Cin, k, k) + biases (PyTorch convention)
        "w1": 0.05 * jax.random.normal(ks[0], (8, 3, 4, 4), jnp.float32),
        "b1": 0.01 * jax.random.normal(ks[1], (8,), jnp.float32),
        "w2": 0.05 * jax.random.normal(ks[2], (16, 8, 4, 4), jnp.float32),
        "b2": 0.01 * jax.random.normal(ks[3], (16,), jnp.float32),   # cancelled by InstanceNorm
        "w3": 0.05 * jax.random.normal(ks[4], (32, 16, 4, 4), jnp.float32),
        "b3": 0.01 * jax.random.normal(ks[5], (32,), jnp.float32),   # cancelled by InstanceNorm
        # ConditionalInstanceNorm2d affine, PyTorch nn.Linear layout (2C, P) + (2C,):
        # gamma-producing rows ~ N(1, 0.02), beta-producing rows zero.
        "a2_w": jnp.concatenate(
            [1.0 + 0.02 * jax.random.normal(ks[6], (16, P), jnp.float32),
             jnp.zeros((16, P), jnp.float32)], axis=0),
        "a2_b": jnp.zeros((32,), jnp.float32),
        "a3_w": jnp.concatenate(
            [1.0 + 0.02 * jax.random.normal(ks[7], (32, P), jnp.float32),
             jnp.zeros((32, P), jnp.float32)], axis=0),
        "a3_b": jnp.zeros((64,), jnp.float32),
        # Final Linear(32*2*2=128 -> 1)
        "wl": 0.05 * jax.random.normal(ks[8], (1, 128), jnp.float32),
        "bl": jnp.zeros((1,), jnp.float32),
    }

    x = jax.random.normal(ks[9], (N, Cin, H, W), jnp.float32)   # image, NCHW
    y = jax.random.normal(ks[10], (N, P), jnp.float32)          # conditioning params

    out = discriminator_forward(params, x, y)
    out = jax.block_until_ready(out)
    assert out.shape == (N, 1), out.shape
    assert bool(jnp.all(jnp.isfinite(out)))
    print("KERNEL_OK")
</pallas_src>

<mosaic_0001>
module attributes {stable_mosaic.version = 11 : i64} {
  func.func @_disc_kernel(%arg0: i32, %arg1: memref<1x64x49xf32, #tpu.memory_space<vmem>>, %arg2: memref<1x1x5xf32, #tpu.memory_space<vmem>>, %arg3: memref<49x8xf32, #tpu.memory_space<vmem>>, %arg4: memref<8x256xf32, #tpu.memory_space<vmem>>, %arg5: memref<16x16x64xf32, #tpu.memory_space<vmem>>, %arg6: memref<16x512xf32, #tpu.memory_space<vmem>>, %arg7: memref<16x4x16xf32, #tpu.memory_space<vmem>>, %arg8: memref<15x64xf32, #tpu.memory_space<vmem>>, %arg9: memref<1x1x1xf32, #tpu.memory_space<vmem>>) attributes {dimension_semantics = [#tpu.dimension_semantics<parallel>], iteration_bounds = array<i64: 2>, scalar_prefetch = 0 : i64, scratch_operands = 0 : i64, tpu.core_type = #tpu.core_type<tc>, window_params = [{transform_indices = @transform_0, window_bounds = array<i64: 1, 64, 49>}, {transform_indices = @transform_1, window_bounds = array<i64: 1, 1, 5>}, {pipeline_mode = #tpu.pipeline_mode<synchronous>, transform_indices = @transform_2, window_bounds = array<i64: 49, 8>}, {pipeline_mode = #tpu.pipeline_mode<synchronous>, transform_indices = @transform_3, window_bounds = array<i64: 8, 256>}, {pipeline_mode = #tpu.pipeline_mode<synchronous>, transform_indices = @transform_4, window_bounds = array<i64: 16, 16, 64>}, {pipeline_mode = #tpu.pipeline_mode<synchronous>, transform_indices = @transform_5, window_bounds = array<i64: 16, 512>}, {pipeline_mode = #tpu.pipeline_mode<synchronous>, transform_indices = @transform_6, window_bounds = array<i64: 16, 4, 16>}, {pipeline_mode = #tpu.pipeline_mode<synchronous>, transform_indices = @transform_7, window_bounds = array<i64: 15, 64>}, {transform_indices = @transform_8, window_bounds = array<i64: 1, 1, 1>}]} {
    %c0 = arith.constant 0 : index
    %c0_0 = arith.constant 0 : index
    %c0_1 = arith.constant 0 : index
    %0 = vector.load %arg2[%c0, %c0_0, %c0_1] : memref<1x1x5xf32, #tpu.memory_space<vmem>>, vector<1x1x5xf32>
    %1 = vector.shape_cast %0 : vector<1x1x5xf32> to vector<1x5xf32>
    %c0_2 = arith.constant 0 : index
    %c0_3 = arith.constant 0 : index
    %c0_4 = arith.constant 0 : index
    %2 = vector.load %arg1[%c0_2, %c0_3, %c0_4] : memref<1x64x49xf32, #tpu.memory_space<vmem>>, vector<1x64x49xf32>
    %3 = vector.shape_cast %2 : vector<1x64x49xf32> to vector<64x49xf32>
    %c0_5 = arith.constant 0 : index
    %c0_6 = arith.constant 0 : index
    %4 = vector.load %arg3[%c0_5, %c0_6] : memref<49x8xf32, #tpu.memory_space<vmem>>, vector<49x8xf32>
    %cst = arith.constant dense<0.000000e+00> : vector<64x8xf32>
    %5 = tpu.matmul %3, %4, %cst {dimension_numbers = #tpu.dot_dimension_numbers<[1], [0], [0], [1], [0, 0, 1, 1], [], []>} : vector<64x49xf32>, vector<49x8xf32>, vector<64x8xf32> -> vector<64x8xf32>
    %cst_7 = arith.constant 0.000000e+00 : f32
    %6 = vector.broadcast %cst_7 : f32 to vector<64x8xf32>
    %7 = arith.cmpf oge, %5, %6 : vector<64x8xf32>
    %cst_8 = arith.constant 2.000000e-01 : f32
    %8 = vector.broadcast %cst_8 : f32 to vector<64x8xf32>
    %9 = arith.mulf %8, %5 : vector<64x8xf32>
    %10 = arith.select %7, %5, %9 : vector<64x8xi1>, vector<64x8xf32>
    %c0_9 = arith.constant 0 : index
    %c0_10 = arith.constant 0 : index
    %11 = vector.load %arg4[%c0_9, %c0_10] : memref<8x256xf32, #tpu.memory_space<vmem>>, vector<8x256xf32>
    %cst_11 = arith.constant dense<0.000000e+00> : vector<64x256xf32>
    %12 = tpu.matmul %10, %11, %cst_11 {dimension_numbers = #tpu.dot_dimension_numbers<[1], [0], [0], [1], [0, 0, 1, 1], [], []>} : vector<64x8xf32>, vector<8x256xf32>, vector<64x256xf32> -> vector<64x256xf32>
    %c0_12 = arith.constant 0 : index
    %c0_13 = arith.constant 0 : index
    %c0_14 = arith.constant 0 : index
    %13 = vector.load %arg5[%c0_12, %c0_13, %c0_14] : memref<16x16x64xf32, #tpu.memory_space<vmem>>, vector<1x16x64xf32>
    %14 = vector.shape_cast %13 : vector<1x16x64xf32> to vector<16x64xf32>
    %15 = vector.extract_strided_slice %12 {offsets = [0, 0], sizes = [64, 16], strides = [1, 1]} : vector<64x256xf32> to vector<64x16xf32>
    %cst_15 = arith.constant dense<0.000000e+00> : vector<16x16xf32>
    %16 = tpu.matmul %14, %15, %cst_15 {dimension_numbers = #tpu.dot_dimension_numbers<[1], [0], [0], [1], [0, 0, 1, 1], [], []>} : vector<16x64xf32>, vector<64x16xf32>, vector<16x16xf32> -> vector<16x16xf32>
    %c1 = arith.constant 1 : index
    %c0_16 = arith.constant 0 : index
    %c0_17 = arith.constant 0 : index
    %17 = vector.load %arg5[%c1, %c0_16, %c0_17] : memref<16x16x64xf32, #tpu.memory_space<vmem>>, vector<1x16x64xf32>
    %18 = vector.shape_cast %17 : vector<1x16x64xf32> to vector<16x64xf32>
    %19 = vector.extract_strided_slice %12 {offsets = [0, 16], sizes = [64, 16], strides = [1, 1]} : vector<64x256xf32> to vector<64x16xf32>
    %cst_18 = arith.constant dense<0.000000e+00> : vector<16x16xf32>
    %20 = tpu.matmul %18, %19, %cst_18 {dimension_numbers = #tpu.dot_dimension_numbers<[1], [0], [0], [1], [0, 0, 1, 1], [], []>} : vector<16x64xf32>, vector<64x16xf32>, vector<16x16xf32> -> vector<16x16xf32>
    %21 = arith.addf %16, %20 : vector<16x16xf32>
    %c2 = arith.constant 2 : index
    %c0_19 = arith.constant 0 : index
    %c0_20 = arith.constant 0 : index
    %22 = vector.load %arg5[%c2, %c0_19, %c0_20] : memref<16x16x64xf32, #tpu.memory_space<vmem>>, vector<1x16x64xf32>
    %23 = vector.shape_cast %22 : vector<1x16x64xf32> to vector<16x64xf32>
    %24 = vector.extract_strided_slice %12 {offsets = [0, 32], sizes = [64, 16], strides = [1, 1]} : vector<64x256xf32> to vector<64x16xf32>
    %cst_21 = arith.constant dense<0.000000e+00> : vector<16x16xf32>
    %25 = tpu.matmul %23, %24, %cst_21 {dimension_numbers = #tpu.dot_dimension_numbers<[1], [0], [0], [1], [0, 0, 1, 1], [], []>} : vector<16x64xf32>, vector<64x16xf32>, vector<16x16xf32> -> vector<16x16xf32>
    %26 = arith.addf %21, %25 : vector<16x16xf32>
    %c3 = arith.constant 3 : index
    %c0_22 = arith.constant 0 : index
    %c0_23 = arith.constant 0 : index
    %27 = vector.load %arg5[%c3, %c0_22, %c0_23] : memref<16x16x64xf32, #tpu.memory_space<vmem>>, vector<1x16x64xf32>
    %28 = vector.shape_cast %27 : vector<1x16x64xf32> to vector<16x64xf32>
    %29 = vector.extract_strided_slice %12 {offsets = [0, 48], sizes = [64, 16], strides = [1, 1]} : vector<64x256xf32> to vector<64x16xf32>
    %cst_24 = arith.constant dense<0.000000e+00> : vector<16x16xf32>
    %30 = tpu.matmul %28, %29, %cst_24 {dimension_numbers = #tpu.dot_dimension_numbers<[1], [0], [0], [1], [0, 0, 1, 1], [], []>} : vector<16x64xf32>, vector<64x16xf32>, vector<16x16xf32> -> vector<16x16xf32>
    %31 = arith.addf %26, %30 : vector<16x16xf32>
    %c4 = arith.constant 4 : index
    %c0_25 = arith.constant 0 : index
    %c0_26 = arith.constant 0 : index
    %32 = vector.load %arg5[%c4, %c0_25, %c0_26] : memref<16x16x64xf32, #tpu.memory_space<vmem>>, vector<1x16x64xf32>
    %33 = vector.shape_cast %32 : vector<1x16x64xf32> to vector<16x64xf32>
    %34 = vector.extract_strided_slice %12 {offsets = [0, 64], sizes = [64, 16], strides = [1, 1]} : vector<64x256xf32> to vector<64x16xf32>
    %cst_27 = arith.constant dense<0.000000e+00> : vector<16x16xf32>
    %35 = tpu.matmul %33, %34, %cst_27 {dimension_numbers = #tpu.dot_dimension_numbers<[1], [0], [0], [1], [0, 0, 1, 1], [], []>} : vector<16x64xf32>, vector<64x16xf32>, vector<16x16xf32> -> vector<16x16xf32>
    %36 = arith.addf %31, %35 : vector<16x16xf32>
    %c5 = arith.constant 5 : index
    %c0_28 = arith.constant 0 : index
    %c0_29 = arith.constant 0 : index
    %37 = vector.load %arg5[%c5, %c0_28, %c0_29] : memref<16x16x64xf32, #tpu.memory_space<vmem>>, vector<1x16x64xf32>
    %38 = vector.shape_cast %37 : vector<1x16x64xf32> to vector<16x64xf32>
    %39 = vector.extract_strided_slice %12 {offsets = [0, 80], sizes = [64, 16], strides = [1, 1]} : vector<64x256xf32> to vector<64x16xf32>
    %cst_30 = arith.constant dense<0.000000e+00> : vector<16x16xf32>
    %40 = tpu.matmul %38, %39, %cst_30 {dimension_numbers = #tpu.dot_dimension_numbers<[1], [0], [0], [1], [0, 0, 1, 1], [], []>} : vector<16x64xf32>, vector<64x16xf32>, vector<16x16xf32> -> vector<16x16xf32>
    %41 = arith.addf %36, %40 : vector<16x16xf32>
    %c6 = arith.constant 6 : index
    %c0_31 = arith.constant 0 : index
    %c0_32 = arith.constant 0 : index
    %42 = vector.load %arg5[%c6, %c0_31, %c0_32] : memref<16x16x64xf32, #tpu.memory_space<vmem>>, vector<1x16x64xf32>
    %43 = vector.shape_cast %42 : vector<1x16x64xf32> to vector<16x64xf32>
    %44 = vector.extract_strided_slice %12 {offsets = [0, 96], sizes = [64, 16], strides = [1, 1]} : vector<64x256xf32> to vector<64x16xf32>
    %cst_33 = arith.constant dense<0.000000e+00> : vector<16x16xf32>
    %45 = tpu.matmul %43, %44, %cst_33 {dimension_numbers = #tpu.dot_dimension_numbers<[1], [0], [0], [1], [0, 0, 1, 1], [], []>} : vector<16x64xf32>, vector<64x16xf32>, vector<16x16xf32> -> vector<16x16xf32>
    %46 = arith.addf %41, %45 : vector<16x16xf32>
    %c7 = arith.constant 7 : index
    %c0_34 = arith.constant 0 : index
    %c0_35 = arith.constant 0 : index
    %47 = vector.load %arg5[%c7, %c0_34, %c0_35] : memref<16x16x64xf32, #tpu.memory_space<vmem>>, vector<1x16x64xf32>
    %48 = vector.shape_cast %47 : vector<1x16x64xf32> to vector<16x64xf32>
    %49 = vector.extract_strided_slice %12 {offsets = [0, 112], sizes = [64, 16], strides = [1, 1]} : vector<64x256xf32> to vector<64x16xf32>
    %cst_36 = arith.constant dense<0.000000e+00> : vector<16x16xf32>
    %50 = tpu.matmul %48, %49, %cst_36 {dimension_numbers = #tpu.dot_dimension_numbers<[1], [0], [0], [1], [0, 0, 1, 1], [], []>} : vector<16x64xf32>, vector<64x16xf32>, vector<16x16xf32> -> vector<16x16xf32>
    %51 = arith.addf %46, %50 : vector<16x16xf32>
    %c8 = arith.constant 8 : index
    %c0_37 = arith.constant 0 : index
    %c0_38 = arith.constant 0 : index
    %52 = vector.load %arg5[%c8, %c0_37, %c0_38] : memref<16x16x64xf32, #tpu.memory_space<vmem>>, vector<1x16x64xf32>
    %53 = vector.shape_cast %52 : vector<1x16x64xf32> to vector<16x64xf32>
    %54 = vector.extract_strided_slice %12 {offsets = [0, 128], sizes = [64, 16], strides = [1, 1]} : vector<64x256xf32> to vector<64x16xf32>
    %cst_39 = arith.constant dense<0.000000e+00> : vector<16x16xf32>
    %55 = tpu.matmul %53, %54, %cst_39 {dimension_numbers = #tpu.dot_dimension_numbers<[1], [0], [0], [1], [0, 0, 1, 1], [], []>} : vector<16x64xf32>, vector<64x16xf32>, vector<16x16xf32> -> vector<16x16xf32>
    %56 = arith.addf %51, %55 : vector<16x16xf32>
    %c9 = arith.constant 9 : index
    %c0_40 = arith.constant 0 : index
    %c0_41 = arith.constant 0 : index
    %57 = vector.load %arg5[%c9, %c0_40, %c0_41] : memref<16x16x64xf32, #tpu.memory_space<vmem>>, vector<1x16x64xf32>
    %58 = vector.shape_cast %57 : vector<1x16x64xf32> to vector<16x64xf32>
    %59 = vector.extract_strided_slice %12 {offsets = [0, 144], sizes = [64, 16], strides = [1, 1]} : vector<64x256xf32> to vector<64x16xf32>
    %cst_42 = arith.constant dense<0.000000e+00> : vector<16x16xf32>
    %60 = tpu.matmul %58, %59, %cst_42 {dimension_numbers = #tpu.dot_dimension_numbers<[1], [0], [0], [1], [0, 0, 1, 1], [], []>} : vector<16x64xf32>, vector<64x16xf32>, vector<16x16xf32> -> vector<16x16xf32>
    %61 = arith.addf %56, %60 : vector<16x16xf32>
    %c10 = arith.constant 10 : index
    %c0_43 = arith.constant 0 : index
    %c0_44 = arith.constant 0 : index
    %62 = vector.load %arg5[%c10, %c0_43, %c0_44] : memref<16x16x64xf32, #tpu.memory_space<vmem>>, vector<1x16x64xf32>
    %63 = vector.shape_cast %62 : vector<1x16x64xf32> to vector<16x64xf32>
    %64 = vector.extract_strided_slice %12 {offsets = [0, 160], sizes = [64, 16], strides = [1, 1]} : vector<64x256xf32> to vector<64x16xf32>
    %cst_45 = arith.constant dense<0.000000e+00> : vector<16x16xf32>
    %65 = tpu.matmul %63, %64, %cst_45 {dimension_numbers = #tpu.dot_dimension_numbers<[1], [0], [0], [1], [0, 0, 1, 1], [], []>} : vector<16x64xf32>, vector<64x16xf32>, vector<16x16xf32> -> vector<16x16xf32>
    %66 = arith.addf %61, %65 : vector<16x16xf32>
    %c11 = arith.constant 11 : index
    %c0_46 = arith.constant 0 : index
    %c0_47 = arith.constant 0 : index
    %67 = vector.load %arg5[%c11, %c0_46, %c0_47] : memref<16x16x64xf32, #tpu.memory_space<vmem>>, vector<1x16x64xf32>
    %68 = vector.shape_cast %67 : vector<1x16x64xf32> to vector<16x64xf32>
    %69 = vector.extract_strided_slice %12 {offsets = [0, 176], sizes = [64, 16], strides = [1, 1]} : vector<64x256xf32> to vector<64x16xf32>
    %cst_48 = arith.constant dense<0.000000e+00> : vector<16x16xf32>
    %70 = tpu.matmul %68, %69, %cst_48 {dimension_numbers = #tpu.dot_dimension_numbers<[1], [0], [0], [1], [0, 0, 1, 1], [], []>} : vector<16x64xf32>, vector<64x16xf32>, vector<16x16xf32> -> vector<16x16xf32>
    %71 = arith.addf %66, %70 : vector<16x16xf32>
    %c12 = arith.constant 12 : index
    %c0_49 = arith.constant 0 : index
    %c0_50 = arith.constant 0 : index
    %72 = vector.load %arg5[%c12, %c0_49, %c0_50] : memref<16x16x64xf32, #tpu.memory_space<vmem>>, vector<1x16x64xf32>
    %73 = vector.shape_cast %72 : vector<1x16x64xf32> to vector<16x64xf32>
    %74 = vector.extract_strided_slice %12 {offsets = [0, 192], sizes = [64, 16], strides = [1, 1]} : vector<64x256xf32> to vector<64x16xf32>
    %cst_51 = arith.constant dense<0.000000e+00> : vector<16x16xf32>
    %75 = tpu.matmul %73, %74, %cst_51 {dimension_numbers = #tpu.dot_dimension_numbers<[1], [0], [0], [1], [0, 0, 1, 1], [], []>} : vector<16x64xf32>, vector<64x16xf32>, vector<16x16xf32> -> vector<16x16xf32>
    %76 = arith.addf %71, %75 : vector<16x16xf32>
    %c13 = arith.constant 13 : index
    %c0_52 = arith.constant 0 : index
    %c0_53 = arith.constant 0 : index
    %77 = vector.load %arg5[%c13, %c0_52, %c0_53] : memref<16x16x64xf32, #tpu.memory_space<vmem>>, vector<1x16x64xf32>
    %78 = vector.shape_cast %77 : vector<1x16x64xf32> to vector<16x64xf32>
    %79 = vector.extract_strided_slice %12 {offsets = [0, 208], sizes = [64, 16], strides = [1, 1]} : vector<64x256xf32> to vector<64x16xf32>
    %cst_54 = arith.constant dense<0.000000e+00> : vector<16x16xf32>
    %80 = tpu.matmul %78, %79, %cst_54 {dimension_numbers = #tpu.dot_dimension_numbers<[1], [0], [0], [1], [0, 0, 1, 1], [], []>} : vector<16x64xf32>, vector<64x16xf32>, vector<16x16xf32> -> vector<16x16xf32>
    %81 = arith.addf %76, %80 : vector<16x16xf32>
    %c14 = arith.constant 14 : index
    %c0_55 = arith.constant 0 : index
    %c0_56 = arith.constant 0 : index
    %82 = vector.load %arg5[%c14, %c0_55, %c0_56] : memref<16x16x64xf32, #tpu.memory_space<vmem>>, vector<1x16x64xf32>
    %83 = vector.shape_cast %82 : vector<1x16x64xf32> to vector<16x64xf32>
    %84 = vector.extract_strided_slice %12 {offsets = [0, 224], sizes = [64, 16], strides = [1, 1]} : vector<64x256xf32> to vector<64x16xf32>
    %cst_57 = arith.constant dense<0.000000e+00> : vector<16x16xf32>
    %85 = tpu.matmul %83, %84, %cst_57 {dimension_numbers = #tpu.dot_dimension_numbers<[1], [0], [0], [1], [0, 0, 1, 1], [], []>} : vector<16x64xf32>, vector<64x16xf32>, vector<16x16xf32> -> vector<16x16xf32>
    %86 = arith.addf %81, %85 : vector<16x16xf32>
    %c15 = arith.constant 15 : index
    %c0_58 = arith.constant 0 : index
    %c0_59 = arith.constant 0 : index
    %87 = vector.load %arg5[%c15, %c0_58, %c0_59] : memref<16x16x64xf32, #tpu.memory_space<vmem>>, vector<1x16x64xf32>
    %88 = vector.shape_cast %87 : vector<1x16x64xf32> to vector<16x64xf32>
    %89 = vector.extract_strided_slice %12 {offsets = [0, 240], sizes = [64, 16], strides = [1, 1]} : vector<64x256xf32> to vector<64x16xf32>
    %cst_60 = arith.constant dense<0.000000e+00> : vector<16x16xf32>
    %90 = tpu.matmul %88, %89, %cst_60 {dimension_numbers = #tpu.dot_dimension_numbers<[1], [0], [0], [1], [0, 0, 1, 1], [], []>} : vector<16x64xf32>, vector<64x16xf32>, vector<16x16xf32> -> vector<16x16xf32>
    %91 = arith.addf %86, %90 : vector<16x16xf32>
    %c0_61 = arith.constant 0 : index
    %c0_62 = arith.constant 0 : index
    %92 = vector.load %arg8[%c0_61, %c0_62] : memref<15x64xf32, #tpu.memory_space<vmem>>, vector<5x32xf32>
    %cst_63 = arith.constant 6.250000e-02 : f32
    %93 = vector.broadcast %cst_63 : f32 to vector<1x16xf32>
    %94 = arith.mulf %91, %91 : vector<16x16xf32>
    %95 = tpu.concatenate %91, %94 in 1 : vector<16x16xf32>, vector<16x16xf32> -> vector<16x32xf32>
    %cst_64 = arith.constant dense<0.000000e+00> : vector<1x32xf32>
    %96 = tpu.matmul %93, %95, %cst_64 {dimension_numbers = #tpu.dot_dimension_numbers<[1], [0], [0], [1], [0, 0, 1, 1], [], []>} : vector<1x16xf32>, vector<16x32xf32>, vector<1x32xf32> -> vector<1x32xf32>
    %97 = vector.extract_strided_slice %96 {offsets = [0, 0], sizes = [1, 16], strides = [1, 1]} : vector<1x32xf32> to vector<1x16xf32>
    %98 = vector.extract_strided_slice %96 {offsets = [0, 16], sizes = [1, 16], strides = [1, 1]} : vector<1x32xf32> to vector<1x16xf32>
    %99 = arith.mulf %97, %97 : vector<1x16xf32>
    %100 = arith.subf %98, %99 : vector<1x16xf32>
    %cst_65 = arith.constant dense<0.000000e+00> : vector<1x32xf32>
    %101 = tpu.matmul %1, %92, %cst_65 {dimension_numbers = #tpu.dot_dimension_numbers<[1], [0], [0], [1], [0, 0, 1, 1], [], []>} : vector<1x5xf32>, vector<5x32xf32>, vector<1x32xf32> -> vector<1x32xf32>
    %102 = vector.extract_strided_slice %101 {offsets = [0, 0], sizes = [1, 16], strides = [1, 1]} : vector<1x32xf32> to vector<1x16xf32>
    %103 = vector.extract_strided_slice %101 {offsets = [0, 16], sizes = [1, 16], strides = [1, 1]} : vector<1x32xf32> to vector<1x16xf32>
    %cst_66 = arith.constant 9.99999974E-6 : f32
    %104 = vector.broadcast %cst_66 : f32 to vector<1x16xf32>
    %105 = arith.addf %100, %104 : vector<1x16xf32>
    %106 = math.rsqrt %105 : vector<1x16xf32>
    %107 = arith.mulf %102, %106 : vector<1x16xf32>
    %108 = arith.mulf %97, %107 : vector<1x16xf32>
    %109 = arith.subf %103, %108 : vector<1x16xf32>
    %110 = vector.broadcast %107 : vector<1x16xf32> to vector<16x16xf32>
    %111 = arith.mulf %91, %110 : vector<16x16xf32>
    %112 = vector.broadcast %109 : vector<1x16xf32> to vector<16x16xf32>
    %113 = arith.addf %111, %112 : vector<16x16xf32>
    %cst_67 = arith.constant 0.000000e+00 : f32
    %114 = vector.broadcast %cst_67 : f32 to vector<16x16xf32>
    %115 = arith.cmpf oge, %113, %114 : vector<16x16xf32>
    %cst_68 = arith.constant 2.000000e-01 : f32
    %116 = vector.broadcast %cst_68 : f32 to vector<16x16xf32>
    %117 = arith.mulf %116, %113 : vector<16x16xf32>
    %118 = arith.select %115, %113, %117 : vector<16x16xi1>, vector<16x16xf32>
    %c0_69 = arith.constant 0 : index
    %c0_70 = arith.constant 0 : index
    %119 = vector.load %arg6[%c0_69, %c0_70] : memref<16x512xf32, #tpu.memory_space<vmem>>, vector<16x512xf32>
    %cst_71 = arith.constant dense<0.000000e+00> : vector<16x512xf32>
    %120 = tpu.matmul %118, %119, %cst_71 {dimension_numbers = #tpu.dot_dimension_numbers<[1], [0], [0], [1], [0, 0, 1, 1], [], []>} : vector<16x16xf32>, vector<16x512xf32>, vector<16x512xf32> -> vector<16x512xf32>
    %c0_72 = arith.constant 0 : index
    %c0_73 = arith.constant 0 : index
    %c0_74 = arith.constant 0 : index
    %121 = vector.load %arg7[%c0_72, %c0_73, %c0_74] : memref<16x4x16xf32, #tpu.memory_space<vmem>>, vector<1x4x16xf32>
    %122 = vector.shape_cast %121 : vector<1x4x16xf32> to vector<4x16xf32>
    %123 = vector.extract_strided_slice %120 {offsets = [0, 0], sizes = [16, 32], strides = [1, 1]} : vector<16x512xf32> to vector<16x32xf32>
    %cst_75 = arith.constant dense<0.000000e+00> : vector<4x32xf32>
    %124 = tpu.matmul %122, %123, %cst_75 {dimension_numbers = #tpu.dot_dimension_numbers<[1], [0], [0], [1], [0, 0, 1, 1], [], []>} : vector<4x16xf32>, vector<16x32xf32>, vector<4x32xf32> -> vector<4x32xf32>
    %c1_76 = arith.constant 1 : index
    %c0_77 = arith.constant 0 : index
    %c0_78 = arith.constant 0 : index
    %125 = vector.load %arg7[%c1_76, %c0_77, %c0_78] : memref<16x4x16xf32, #tpu.memory_space<vmem>>, vector<1x4x16xf32>
    %126 = vector.shape_cast %125 : vector<1x4x16xf32> to vector<4x16xf32>
    %127 = vector.extract_strided_slice %120 {offsets = [0, 32], sizes = [16, 32], strides = [1, 1]} : vector<16x512xf32> to vector<16x32xf32>
    %cst_79 = arith.constant dense<0.000000e+00> : vector<4x32xf32>
    %128 = tpu.matmul %126, %127, %cst_79 {dimension_numbers = #tpu.dot_dimension_numbers<[1], [0], [0], [1], [0, 0, 1, 1], [], []>} : vector<4x16xf32>, vector<16x32xf32>, vector<4x32xf32> -> vector<4x32xf32>
    %129 = arith.addf %124, %128 : vector<4x32xf32>
    %c2_80 = arith.constant 2 : index
    %c0_81 = arith.constant 0 : index
    %c0_82 = arith.constant 0 : index
    %130 = vector.load %arg7[%c2_80, %c0_81, %c0_82] : memref<16x4x16xf32, #tpu.memory_space<vmem>>, vector<1x4x16xf32>
    %131 = vector.shape_cast %130 : vector<1x4x16xf32> to vector<4x16xf32>
    %132 = vector.extract_strided_slice %120 {offsets = [0, 64], sizes = [16, 32], strides = [1, 1]} : vector<16x512xf32> to vector<16x32xf32>
    %cst_83 = arith.constant dense<0.000000e+00> : vector<4x32xf32>
    %133 = tpu.matmul %131, %132, %cst_83 {dimension_numbers = #tpu.dot_dimension_numbers<[1], [0], [0], [1], [0, 0, 1, 1], [], []>} : vector<4x16xf32>, vector<16x32xf32>, vector<4x32xf32> -> vector<4x32xf32>
    %134 = arith.addf %129, %133 : vector<4x32xf32>
    %c3_84 = arith.constant 3 : index
    %c0_85 = arith.constant 0 : index
    %c0_86 = arith.constant 0 : index
    %135 = vector.load %arg7[%c3_84, %c0_85, %c0_86] : memref<16x4x16xf32, #tpu.memory_space<vmem>>, vector<1x4x16xf32>
    %136 = vector.shape_cast %135 : vector<1x4x16xf32> to vector<4x16xf32>
    %137 = vector.extract_strided_slice %120 {offsets = [0, 96], sizes = [16, 32], strides = [1, 1]} : vector<16x512xf32> to vector<16x32xf32>
    %cst_87 = arith.constant dense<0.000000e+00> : vector<4x32xf32>
    %138 = tpu.matmul %136, %137, %cst_87 {dimension_numbers = #tpu.dot_dimension_numbers<[1], [0], [0], [1], [0, 0, 1, 1], [], []>} : vector<4x16xf32>, vector<16x32xf32>, vector<4x32xf32> -> vector<4x32xf32>
    %139 = arith.addf %134, %138 : vector<4x32xf32>
    %c4_88 = arith.constant 4 : index
    %c0_89 = arith.constant 0 : index
    %c0_90 = arith.constant 0 : index
    %140 = vector.load %arg7[%c4_88, %c0_89, %c0_90] : memref<16x4x16xf32, #tpu.memory_space<vmem>>, vector<1x4x16xf32>
    %141 = vector.shape_cast %140 : vector<1x4x16xf32> to vector<4x16xf32>
    %142 = vector.extract_strided_slice %120 {offsets = [0, 128], sizes = [16, 32], strides = [1, 1]} : vector<16x512xf32> to vector<16x32xf32>
    %cst_91 = arith.constant dense<0.000000e+00> : vector<4x32xf32>
    %143 = tpu.matmul %141, %142, %cst_91 {dimension_numbers = #tpu.dot_dimension_numbers<[1], [0], [0], [1], [0, 0, 1, 1], [], []>} : vector<4x16xf32>, vector<16x32xf32>, vector<4x32xf32> -> vector<4x32xf32>
    %144 = arith.addf %139, %143 : vector<4x32xf32>
    %c5_92 = arith.constant 5 : index
    %c0_93 = arith.constant 0 : index
    %c0_94 = arith.constant 0 : index
    %145 = vector.load %arg7[%c5_92, %c0_93, %c0_94] : memref<16x4x16xf32, #tpu.memory_space<vmem>>, vector<1x4x16xf32>
    %146 = vector.shape_cast %145 : vector<1x4x16xf32> to vector<4x16xf32>
    %147 = vector.extract_strided_slice %120 {offsets = [0, 160], sizes = [16, 32], strides = [1, 1]} : vector<16x512xf32> to vector<16x32xf32>
    %cst_95 = arith.constant dense<0.000000e+00> : vector<4x32xf32>
    %148 = tpu.matmul %146, %147, %cst_95 {dimension_numbers = #tpu.dot_dimension_numbers<[1], [0], [0], [1], [0, 0, 1, 1], [], []>} : vector<4x16xf32>, vector<16x32xf32>, vector<4x32xf32> -> vector<4x32xf32>
    %149 = arith.addf %144, %148 : vector<4x32xf32>
    %c6_96 = arith.constant 6 : index
    %c0_97 = arith.constant 0 : index
    %c0_98 = arith.constant 0 : index
    %150 = vector.load %arg7[%c6_96, %c0_97, %c0_98] : memref<16x4x16xf32, #tpu.memory_space<vmem>>, vector<1x4x16xf32>
    %151 = vector.shape_cast %150 : vector<1x4x16xf32> to vector<4x16xf32>
    %152 = vector.extract_strided_slice %120 {offsets = [0, 192], sizes = [16, 32], strides = [1, 1]} : vector<16x512xf32> to vector<16x32xf32>
    %cst_99 = arith.constant dense<0.000000e+00> : vector<4x32xf32>
    %153 = tpu.matmul %151, %152, %cst_99 {dimension_numbers = #tpu.dot_dimension_numbers<[1], [0], [0], [1], [0, 0, 1, 1], [], []>} : vector<4x16xf32>, vector<16x32xf32>, vector<4x32xf32> -> vector<4x32xf32>
    %154 = arith.addf %149, %153 : vector<4x32xf32>
    %c7_100 = arith.constant 7 : index
    %c0_101 = arith.constant 0 : index
    %c0_102 = arith.constant 0 : index
    %155 = vector.load %arg7[%c7_100, %c0_101, %c0_102] : memref<16x4x16xf32, #tpu.memory_space<vmem>>, vector<1x4x16xf32>
    %156 = vector.shape_cast %155 : vector<1x4x16xf32> to vector<4x16xf32>
    %157 = vector.extract_strided_slice %120 {offsets = [0, 224], sizes = [16, 32], strides = [1, 1]} : vector<16x512xf32> to vector<16x32xf32>
    %cst_103 = arith.constant dense<0.000000e+00> : vector<4x32xf32>
    %158 = tpu.matmul %156, %157, %cst_103 {dimension_numbers = #tpu.dot_dimension_numbers<[1], [0], [0], [1], [0, 0, 1, 1], [], []>} : vector<4x16xf32>, vector<16x32xf32>, vector<4x32xf32> -> vector<4x32xf32>
    %159 = arith.addf %154, %158 : vector<4x32xf32>
    %c8_104 = arith.constant 8 : index
    %c0_105 = arith.constant 0 : index
    %c0_106 = arith.constant 0 : index
    %160 = vector.load %arg7[%c8_104, %c0_105, %c0_106] : memref<16x4x16xf32, #tpu.memory_space<vmem>>, vector<1x4x16xf32>
    %161 = vector.shape_cast %160 : vector<1x4x16xf32> to vector<4x16xf32>
    %162 = vector.extract_strided_slice %120 {offsets = [0, 256], sizes = [16, 32], strides = [1, 1]} : vector<16x512xf32> to vector<16x32xf32>
    %cst_107 = arith.constant dense<0.000000e+00> : vector<4x32xf32>
    %163 = tpu.matmul %161, %162, %cst_107 {dimension_numbers = #tpu.dot_dimension_numbers<[1], [0], [0], [1], [0, 0, 1, 1], [], []>} : vector<4x16xf32>, vector<16x32xf32>, vector<4x32xf32> -> vector<4x32xf32>
    %164 = arith.addf %159, %163 : vector<4x32xf32>
    %c9_108 = arith.constant 9 : index
    %c0_109 = arith.constant 0 : index
    %c0_110 = arith.constant 0 : index
    %165 = vector.load %arg7[%c9_108, %c0_109, %c0_110] : memref<16x4x16xf32, #tpu.memory_space<vmem>>, vector<1x4x16xf32>
    %166 = vector.shape_cast %165 : vector<1x4x16xf32> to vector<4x16xf32>
    %167 = vector.extract_strided_slice %120 {offsets = [0, 288], sizes = [16, 32], strides = [1, 1]} : vector<16x512xf32> to vector<16x32xf32>
    %cst_111 = arith.constant dense<0.000000e+00> : vector<4x32xf32>
    %168 = tpu.matmul %166, %167, %cst_111 {dimension_numbers = #tpu.dot_dimension_numbers<[1], [0], [0], [1], [0, 0, 1, 1], [], []>} : vector<4x16xf32>, vector<16x32xf32>, vector<4x32xf32> -> vector<4x32xf32>
    %169 = arith.addf %164, %168 : vector<4x32xf32>
    %c10_112 = arith.constant 10 : index
    %c0_113 = arith.constant 0 : index
    %c0_114 = arith.constant 0 : index
    %170 = vector.load %arg7[%c10_112, %c0_113, %c0_114] : memref<16x4x16xf32, #tpu.memory_space<vmem>>, vector<1x4x16xf32>
    %171 = vector.shape_cast %170 : vector<1x4x16xf32> to vector<4x16xf32>
    %172 = vector.extract_strided_slice %120 {offsets = [0, 320], sizes = [16, 32], strides = [1, 1]} : vector<16x512xf32> to vector<16x32xf32>
    %cst_115 = arith.constant dense<0.000000e+00> : vector<4x32xf32>
    %173 = tpu.matmul %171, %172, %cst_115 {dimension_numbers = #tpu.dot_dimension_numbers<[1], [0], [0], [1], [0, 0, 1, 1], [], []>} : vector<4x16xf32>, vector<16x32xf32>, vector<4x32xf32> -> vector<4x32xf32>
    %174 = arith.addf %169, %173 : vector<4x32xf32>
    %c11_116 = arith.constant 11 : index
    %c0_117 = arith.constant 0 : index
    %c0_118 = arith.constant 0 : index
    %175 = vector.load %arg7[%c11_116, %c0_117, %c0_118] : memref<16x4x16xf32, #tpu.memory_space<vmem>>, vector<1x4x16xf32>
    %176 = vector.shape_cast %175 : vector<1x4x16xf32> to vector<4x16xf32>
    %177 = vector.extract_strided_slice %120 {offsets = [0, 352], sizes = [16, 32], strides = [1, 1]} : vector<16x512xf32> to vector<16x32xf32>
    %cst_119 = arith.constant dense<0.000000e+00> : vector<4x32xf32>
    %178 = tpu.matmul %176, %177, %cst_119 {dimension_numbers = #tpu.dot_dimension_numbers<[1], [0], [0], [1], [0, 0, 1, 1], [], []>} : vector<4x16xf32>, vector<16x32xf32>, vector<4x32xf32> -> vector<4x32xf32>
    %179 = arith.addf %174, %178 : vector<4x32xf32>
    %c12_120 = arith.constant 12 : index
    %c0_121 = arith.constant 0 : index
    %c0_122 = arith.constant 0 : index
    %180 = vector.load %arg7[%c12_120, %c0_121, %c0_122] : memref<16x4x16xf32, #tpu.memory_space<vmem>>, vector<1x4x16xf32>
    %181 = vector.shape_cast %180 : vector<1x4x16xf32> to vector<4x16xf32>
    %182 = vector.extract_strided_slice %120 {offsets = [0, 384], sizes = [16, 32], strides = [1, 1]} : vector<16x512xf32> to vector<16x32xf32>
    %cst_123 = arith.constant dense<0.000000e+00> : vector<4x32xf32>
    %183 = tpu.matmul %181, %182, %cst_123 {dimension_numbers = #tpu.dot_dimension_numbers<[1], [0], [0], [1], [0, 0, 1, 1], [], []>} : vector<4x16xf32>, vector<16x32xf32>, vector<4x32xf32> -> vector<4x32xf32>
    %184 = arith.addf %179, %183 : vector<4x32xf32>
    %c13_124 = arith.constant 13 : index
    %c0_125 = arith.constant 0 : index
    %c0_126 = arith.constant 0 : index
    %185 = vector.load %arg7[%c13_124, %c0_125, %c0_126] : memref<16x4x16xf32, #tpu.memory_space<vmem>>, vector<1x4x16xf32>
    %186 = vector.shape_cast %185 : vector<1x4x16xf32> to vector<4x16xf32>
    %187 = vector.extract_strided_slice %120 {offsets = [0, 416], sizes = [16, 32], strides = [1, 1]} : vector<16x512xf32> to vector<16x32xf32>
    %cst_127 = arith.constant dense<0.000000e+00> : vector<4x32xf32>
    %188 = tpu.matmul %186, %187, %cst_127 {dimension_numbers = #tpu.dot_dimension_numbers<[1], [0], [0], [1], [0, 0, 1, 1], [], []>} : vector<4x16xf32>, vector<16x32xf32>, vector<4x32xf32> -> vector<4x32xf32>
    %189 = arith.addf %184, %188 : vector<4x32xf32>
    %c14_128 = arith.constant 14 : index
    %c0_129 = arith.constant 0 : index
    %c0_130 = arith.constant 0 : index
    %190 = vector.load %arg7[%c14_128, %c0_129, %c0_130] : memref<16x4x16xf32, #tpu.memory_space<vmem>>, vector<1x4x16xf32>
    %191 = vector.shape_cast %190 : vector<1x4x16xf32> to vector<4x16xf32>
    %192 = vector.extract_strided_slice %120 {offsets = [0, 448], sizes = [16, 32], strides = [1, 1]} : vector<16x512xf32> to vector<16x32xf32>
    %cst_131 = arith.constant dense<0.000000e+00> : vector<4x32xf32>
    %193 = tpu.matmul %191, %192, %cst_131 {dimension_numbers = #tpu.dot_dimension_numbers<[1], [0], [0], [1], [0, 0, 1, 1], [], []>} : vector<4x16xf32>, vector<16x32xf32>, vector<4x32xf32> -> vector<4x32xf32>
    %194 = arith.addf %189, %193 : vector<4x32xf32>
    %c15_132 = arith.constant 15 : index
    %c0_133 = arith.constant 0 : index
    %c0_134 = arith.constant 0 : index
    %195 = vector.load %arg7[%c15_132, %c0_133, %c0_134] : memref<16x4x16xf32, #tpu.memory_space<vmem>>, vector<1x4x16xf32>
    %196 = vector.shape_cast %195 : vector<1x4x16xf32> to vector<4x16xf32>
    %197 = vector.extract_strided_slice %120 {offsets = [0, 480], sizes = [16, 32], strides = [1, 1]} : vector<16x512xf32> to vector<16x32xf32>
    %cst_135 = arith.constant dense<0.000000e+00> : vector<4x32xf32>
    %198 = tpu.matmul %196, %197, %cst_135 {dimension_numbers = #tpu.dot_dimension_numbers<[1], [0], [0], [1], [0, 0, 1, 1], [], []>} : vector<4x16xf32>, vector<16x32xf32>, vector<4x32xf32> -> vector<4x32xf32>
    %199 = arith.addf %194, %198 : vector<4x32xf32>
    %c5_136 = arith.constant 5 : index
    %c0_137 = arith.constant 0 : index
    %200 = vector.load %arg8[%c5_136, %c0_137] : memref<15x64xf32, #tpu.memory_space<vmem>>, vector<5x64xf32>
    %cst_138 = arith.constant 2.500000e-01 : f32
    %201 = vector.broadcast %cst_138 : f32 to vector<1x4xf32>
    %202 = arith.mulf %199, %199 : vector<4x32xf32>
    %203 = tpu.concatenate %199, %202 in 1 : vector<4x32xf32>, vector<4x32xf32> -> vector<4x64xf32>
    %cst_139 = arith.constant dense<0.000000e+00> : vector<1x64xf32>
    %204 = tpu.matmul %201, %203, %cst_139 {dimension_numbers = #tpu.dot_dimension_numbers<[1], [0], [0], [1], [0, 0, 1, 1], [], []>} : vector<1x4xf32>, vector<4x64xf32>, vector<1x64xf32> -> vector<1x64xf32>
    %205 = vector.extract_strided_slice %204 {offsets = [0, 0], sizes = [1, 32], strides = [1, 1]} : vector<1x64xf32> to vector<1x32xf32>
    %206 = vector.extract_strided_slice %204 {offsets = [0, 32], sizes = [1, 32], strides = [1, 1]} : vector<1x64xf32> to vector<1x32xf32>
    %207 = arith.mulf %205, %205 : vector<1x32xf32>
    %208 = arith.subf %206, %207 : vector<1x32xf32>
    %cst_140 = arith.constant dense<0.000000e+00> : vector<1x64xf32>
    %209 = tpu.matmul %1, %200, %cst_140 {dimension_numbers = #tpu.dot_dimension_numbers<[1], [0], [0], [1], [0, 0, 1, 1], [], []>} : vector<1x5xf32>, vector<5x64xf32>, vector<1x64xf32> -> vector<1x64xf32>
    %210 = vector.extract_strided_slice %209 {offsets = [0, 0], sizes = [1, 32], strides = [1, 1]} : vector<1x64xf32> to vector<1x32xf32>
    %211 = vector.extract_strided_slice %209 {offsets = [0, 32], sizes = [1, 32], strides = [1, 1]} : vector<1x64xf32> to vector<1x32xf32>
    %cst_141 = arith.constant 9.99999974E-6 : f32
    %212 = vector.broadcast %cst_141 : f32 to vector<1x32xf32>
    %213 = arith.addf %208, %212 : vector<1x32xf32>
    %214 = math.rsqrt %213 : vector<1x32xf32>
    %215 = arith.mulf %210, %214 : vector<1x32xf32>
    %216 = arith.mulf %205, %215 : vector<1x32xf32>
    %217 = arith.subf %211, %216 : vector<1x32xf32>
    %218 = vector.broadcast %215 : vector<1x32xf32> to vector<4x32xf32>
    %219 = arith.mulf %199, %218 : vector<4x32xf32>
    %220 = vector.broadcast %217 : vector<1x32xf32> to vector<4x32xf32>
    %221 = arith.addf %219, %220 : vector<4x32xf32>
    %cst_142 = arith.constant 0.000000e+00 : f32
    %222 = vector.broadcast %cst_142 : f32 to vector<4x32xf32>
    %223 = arith.cmpf oge, %221, %222 : vector<4x32xf32>
    %cst_143 = arith.constant 2.000000e-01 : f32
    %224 = vector.broadcast %cst_143 : f32 to vector<4x32xf32>
    %225 = arith.mulf %224, %221 : vector<4x32xf32>
    %226 = arith.select %223, %221, %225 : vector<4x32xi1>, vector<4x32xf32>
    %c10_144 = arith.constant 10 : index
    %c0_145 = arith.constant 0 : index
    %227 = vector.load %arg8[%c10_144, %c0_145] : memref<15x64xf32, #tpu.memory_space<vmem>>, vector<4x32xf32>
    %c14_146 = arith.constant 14 : index
    %c0_147 = arith.constant 0 : index
    %228 = vector.load %arg8[%c14_146, %c0_147] : memref<15x64xf32, #tpu.memory_space<vmem>>, vector<1x1xf32>
    %229 = arith.mulf %226, %227 : vector<4x32xf32>
    %cst_148 = arith.constant 1.000000e+00 : f32
    %230 = vector.broadcast %cst_148 : f32 to vector<1x4xf32>
    %cst_149 = arith.constant dense<0.000000e+00> : vector<1x32xf32>
    %231 = tpu.matmul %230, %229, %cst_149 {dimension_numbers = #tpu.dot_dimension_numbers<[1], [0], [0], [1], [0, 0, 1, 1], [], []>} : vector<1x4xf32>, vector<4x32xf32>, vector<1x32xf32> -> vector<1x32xf32>
    %cst_150 = arith.constant 1.000000e+00 : f32
    %232 = vector.broadcast %cst_150 : f32 to vector<32x1xf32>
    %cst_151 = arith.constant dense<0.000000e+00> : vector<1x1xf32>
    %233 = tpu.matmul %231, %232, %cst_151 {dimension_numbers = #tpu.dot_dimension_numbers<[1], [0], [0], [1], [0, 0, 1, 1], [], []>} : vector<1x32xf32>, vector<32x1xf32>, vector<1x1xf32> -> vector<1x1xf32>
    %234 = arith.addf %233, %228 : vector<1x1xf32>
    %c0_152 = arith.constant 0 : index
    %c0_153 = arith.constant 0 : index
    %c0_154 = arith.constant 0 : index
    %235 = vector.load %arg9[%c0_152, %c0_153, %c0_154] : memref<1x1x1xf32, #tpu.memory_space<vmem>>, vector<1x1x1xf32>
    %236 = vector.shape_cast %235 : vector<1x1x1xf32> to vector<1x1xf32>
    %237 = vector.shape_cast %234 : vector<1x1xf32> to vector<1x1x1xf32>
    tpu.vector_store %arg9[%c0_152, %c0_153, %c0_154], %237 {strides = array<i32>} : memref<1x1x1xf32, #tpu.memory_space<vmem>>, vector<1x1x1xf32>,
    return
  }
  func.func @transform_0(%arg0: i32) -> (i32, i32, i32) {
    %c0_i32 = arith.constant 0 : i32
    %c0_i32_0 = arith.constant 0 : i32
    %c0_i32_1 = arith.constant 0 : i32
    return %arg0, %c0_i32, %c0_i32_0 : i32, i32, i32
  }
  func.func @transform_1(%arg0: i32) -> (i32, i32, i32) {
    %c0_i32 = arith.constant 0 : i32
    %c0_i32_0 = arith.constant 0 : i32
    %c0_i32_1 = arith.constant 0 : i32
    return %arg0, %c0_i32, %c0_i32_0 : i32, i32, i32
  }
  func.func @transform_2(%arg0: i32) -> (i32, i32) {
    %c0_i32 = arith.constant 0 : i32
    %c0_i32_0 = arith.constant 0 : i32
    %c0_i32_1 = arith.constant 0 : i32
    return %c0_i32, %c0_i32_0 : i32, i32
  }
  func.func @transform_3(%arg0: i32) -> (i32, i32) {
    %c0_i32 = arith.constant 0 : i32
    %c0_i32_0 = arith.constant 0 : i32
    %c0_i32_1 = arith.constant 0 : i32
    return %c0_i32, %c0_i32_0 : i32, i32
  }
  func.func @transform_4(%arg0: i32) -> (i32, i32, i32) {
    %c0_i32 = arith.constant 0 : i32
    %c0_i32_0 = arith.constant 0 : i32
    %c0_i32_1 = arith.constant 0 : i32
    %c0_i32_2 = arith.constant 0 : i32
    return %c0_i32, %c0_i32_0, %c0_i32_1 : i32, i32, i32
  }
  func.func @transform_5(%arg0: i32) -> (i32, i32) {
    %c0_i32 = arith.constant 0 : i32
    %c0_i32_0 = arith.constant 0 : i32
    %c0_i32_1 = arith.constant 0 : i32
    return %c0_i32, %c0_i32_0 : i32, i32
  }
  func.func @transform_6(%arg0: i32) -> (i32, i32, i32) {
    %c0_i32 = arith.constant 0 : i32
    %c0_i32_0 = arith.constant 0 : i32
    %c0_i32_1 = arith.constant 0 : i32
    %c0_i32_2 = arith.constant 0 : i32
    return %c0_i32, %c0_i32_0, %c0_i32_1 : i32, i32, i32
  }
  func.func @transform_7(%arg0: i32) -> (i32, i32) {
    %c0_i32 = arith.constant 0 : i32
    %c0_i32_0 = arith.constant 0 : i32
    %c0_i32_1 = arith.constant 0 : i32
    return %c0_i32, %c0_i32_0 : i32, i32
  }
  func.func @transform_8(%arg0: i32) -> (i32, i32, i32) {
    %c0_i32 = arith.constant 0 : i32
    %c0_i32_0 = arith.constant 0 : i32
    %c0_i32_1 = arith.constant 0 : i32
    return %arg0, %c0_i32, %c0_i32_0 : i32, i32, i32
  }
}

</mosaic_0001>

<bundles_post_ra>
// kernel: discriminator_forward.1
= control target key start
LH: loop header
LB: loop body
LE: loop exit
PB: predicated region body
PF: predicated region fallthrough
CT: control target
= control target key end

     0   :  { %s6108_s27 = smov 0   ;;  %s6767_s0 = inlined_call_operand.vmem [shape: f32[2,64,49], index: 0, kind: input, shape index: {}]   ;;  %s6768_s1 = inlined_call_operand.vmem [shape: f32[2,1,5], index: 1, kind: input, shape index: {}]   ;;  %s6769_s2 = inlined_call_operand.vmem [shape: f32[49,8], index: 2, kind: input, shape index: {}]   ;;  %s6770_s3 = inlined_call_operand.vmem [shape: f32[8,256], index: 3, kind: input, shape index: {}]   ;;  %s6771_s4 = inlined_call_operand.vmem [shape: f32[16,16,64], index: 4, kind: input, shape index: {}]   ;;  %s6772_s5 = inlined_call_operand.vmem [shape: f32[16,512], index: 5, kind: input, shape index: {}]   ;;  %s6773_s6 = inlined_call_operand.vmem [shape: f32[16,4,16], index: 6, kind: input, shape index: {}]   ;;  %s6774_s7 = inlined_call_operand.vmem [shape: f32[15,64], index: 7, kind: input, shape index: {}]   ;;  %s6775_s8 = inlined_call_operand.vmem [shape: f32[2,1,1], index: 8, kind: output, shape index: {}]  }
   0x1 LB: > { %s4426_s28 = sadd.s32 4294967295, %s6047_s27   ;;  %p4430_p0 = scmp.ge.s32.totalorder %s6047_s27, 1  ;;  %s6047_s27 = sphi %s6108_s27, %s18_s27  }
   0x2   : > { %p270_p1 = scmp.lt.s32.totalorder %s6047_s27, 3 }
   0x4   : > { %p271_p2 = pnand %p4430_p0, %p270_p1 }
   0x5   : > { %v325_v0 = vld [vmem:[%s6769_s2] sm:$0xff] (!%p271_p2)  ;;  %v326_v1 = vld [vmem:[%s6769_s2 + $0x8] sm:$0xff] (!%p271_p2)  ;;  %v327_v2 = vld [vmem:[%s6769_s2 + $0x10] sm:$0xff] (!%p271_p2)  ;;  %p305_p3 = scmp.lt.s32.totalorder (!%p271_p2), %s4426_s28, 1  ;;  %vm332_vm0 = vcmask (!%p271_p2), 400384   ;;  %vm357_vm1 = vcmask (!%p271_p2), 1040384  }
   0x6   : > { %274 = sbr.rel (%p271_p2) target bundleno = 3746 (0xea2), region = 52  ;;  %v5279_v3 = vpack.c.bf16 (!%p271_p2), %v326_v1, %v325_v0  ;;  %v328_v4 = vld [vmem:[%s6769_s2 + $0x18] sm:$0xff] (!%p271_p2)  ;;  %v329_v6 = vld [vmem:[%s6769_s2 + $0x20] sm:$0xff] (!%p271_p2)  ;;  %v330_v7 = vld [vmem:[%s6769_s2 + $0x28] sm:$0xff] (!%p271_p2)  ;;  %v6049_v20 = vmov (!%p271_p2), 0.0   ;;  %vm492_vm3 = vcmask (!%p271_p2), 64512  }
   0x7   : > { %v5283_v5 = vpack.c.bf16 (!%p271_p2), %v328_v4, %v327_v2  ;;  %v5287_v8 = vpack.c.bf16 (!%p271_p2), %v330_v7, %v329_v6  ;;  %v331_v10 = vld [vmem:[%s6769_s2 + $0x30] sm:$0x1] (!%p271_p2)  ;;  %v491_v18 = vld [vmem:[%s6770_s3 + $0x8] sm:$0xff] (!%p271_p2)  ;;  %v490_v19 = vld [vmem:[%s6770_s3] sm:$0xff] (!%p271_p2)  ;;  %581 = vmatprep.mubr.f32.mxu1 (!%p271_p2), %v6049_v20  ;;  %s6050_s9 = smov (!%p271_p2), 64   ;;  %s6051_s10 = smov (!%p271_p2), 48  }
   0x8   : > { %5280 = vmatprep.subr.bf16.mxu0 (!%p271_p2), %v5279_v3  ;;  %517 = vmatprep.subr.mxu1 (!%p271_p2), %v491_v18  ;;  %s6052_s11 = smov (!%p271_p2), 32   ;;  %vm667_vm11 = vcmask (!%p271_p2), 523264   ;;  %s6053_s14 = smov (!%p271_p2), 16   ;;  %vm6058_vm12 = vmmov (!%p271_p2), 0   ;;  %vm2365_vm13 = vcmask (!%p271_p2), 130048   ;;  %vm2451_vm14 = vcmask (!%p271_p2), 1044480  }
   0x9   : > { %5282 = vmatpush3.bf16.msra.mxu0 (!%p271_p2), %v5279_v3  ;;  %518 = vmatpush1.msra.mxu1 (!%p271_p2), %v490_v19  ;;  %s6054_s15 = smov (!%p271_p2), 112   ;;  %s6055_s16 = smov (!%p271_p2), 96   ;;  %vm2447_vm15 = vcmask (!%p271_p2), 39936  }
   0xa   : > { %5284 = vmatprep.subr.bf16.mxu0 (!%p271_p2), %v5283_v5  ;;  %s6056_s17 = smov (!%p271_p2), 80  }
   0xd   : > { %s6777_s28 = smov (!%p305_p3, %s4426_s28), 1  ;;  %5286 = vmatpush3.bf16.msra.mxu0 %v5283_v5 }
   0xe   : > { %s4559_s19 = sshll.u32 %s6777_s28, 6  ;;  %5288 = vmatprep.subr.bf16.mxu0 %v5287_v8  ;;  %s312_s24 = scalar_lea.vmem %s6768_s1, %s6777_s28 }
   0xf   : > { %s309_s22 = scalar_lea.vmem %s6767_s0, %s4559_s19 }
  0x10   : > { %v317_v9 = vld [vmem:[%s309_s22] sm:$0xff]  ;;  %v318_v11 = vld [vmem:[%s309_s22 + $0x8] sm:$0xff]  ;;  %v319_v12 = vld [vmem:[%s309_s22 + $0x10] sm:$0xff] }
  0x11   : > { %4813 = vmatprep.mubr.msk.f32.mxu0 %vm332_vm0, %v317_v9  ;;  %5290 = vmatpush3.bf16.msra.mxu0 %v5287_v8  ;;  %v320_v13 = vld [vmem:[%s309_s22 + $0x18] sm:$0xff]  ;;  %v321_v14 = vld [vmem:[%s309_s22 + $0x20] sm:$0xff]  ;;  %v322_v15 = vld [vmem:[%s309_s22 + $0x28] sm:$0xff] }
  0x12   : > { %4811 = vmatprep.subr.msk.mxu0 %vm357_vm1, %v331_v10  ;;  %v323_v16 = vld [vmem:[%s309_s22 + $0x30] sm:$0xff]  ;;  %v324_v17 = vld [vmem:[%s309_s22 + $0x38] sm:$0xff]  ;;  %v4464_v8 = vld [vmem:[%s6771_s4 + $0x40] sm:$0xff] }
  0x15   : > { %4812 = vmatpush3.msk.msra.mxu0 %vm357_vm1, %v331_v10 }
  0x16   : > { %4814 = vmatmul.mubr.msk.f32.vlgmr.msra.gmra.mrb[0].mxu0 %vm332_vm0, %v318_v11 }
  0x17   : > { %4816 = vmatprep.mubr.msk.f32.mxu0 %vm332_vm0, %v319_v12 }
  0x1a   : > { %4817 = vmatmul.mubr.msk.f32.gmra.mrb[2].mxu0 %vm332_vm0, %v320_v13 }
  0x1b   : > { %4819 = vmatprep.mubr.msk.f32.mxu0 %vm332_vm0, %v321_v14  ;;  %v4450_v14 = vld [vmem:[%s6771_s4 + $0x10] sm:$0xff] }
  0x1e   : > { %4820 = vmatmul.mubr.msk.f32.gmra.mrb[4].mxu0 %vm332_vm0, %v322_v15 }
  0x1f   : > { %4822 = vmatprep.mubr.msk.f32.mxu0 %vm332_vm0, %v323_v16 }
  0x22   : > { %4823 = vmatmul.mubr.msk.f32.gmra.mrb[6].mxu0 %vm332_vm0, %v324_v17 }
  0x23   : > { %4917 = vmatprep.mubr.msk.f32.mxu0 %vm667_vm11, %v4464_v8 }
  0xe9   : > { %v4815_v21 = vpop.f32.mrb[0].mxu0 }
  0xea   : > { %v427_v22 = vpop.f32.mrb[1].mxu0  ;;  %v475_v24 = vmul.f32 0.2, %v4815_v21  ;;  %vm467_vm4 = vcmp.ge.f32.partialorder %v4815_v21, 0.0 }
  0xeb   : > { %vm466_vm2 = vcmp.ge.f32.partialorder %v427_v22, 0.0  ;;  %v474_v23 = vmul.f32 0.2, %v427_v22 }
  0xec   : > { %v483_v29 = vsel %vm467_vm4, %v4815_v21, %v475_v24  ;;  %vm4029_vm4 = vcmask 31744  }
  0xed   : > { %v4818_v25 = vpop.f32.mrb[2].mxu0  ;;  %v482_v26 = vsel %vm466_vm2, %v427_v22, %v474_v23  ;;  %vm4027_vm2 = vcmask 261120  }
  0xee   : > { %4442 = vmatmul.mubr.msk.f32.vlgmr.msra.gmra.mrb[0].mxu1 %vm492_vm3, %v482_v26  ;;  %v437_v27 = vpop.f32.mrb[3].mxu0  ;;  %v477_v32 = vmul.f32 0.2, %v4818_v25  ;;  %vm469_vm6 = vcmp.ge.f32.partialorder %v4818_v25, 0.0 }
  0xef   : > { %587 = vmatprep.mubr.f32.mxu1 %v6049_v20  ;;  %v476_v28 = vmul.f32 0.2, %v437_v27  ;;  %vm468_vm5 = vcmp.ge.f32.partialorder %v437_v27, 0.0 }
  0xf0   : > { %v485_v37 = vsel %vm469_vm6, %v4818_v25, %v477_v32  ;;  %vm4368_vm6 = vcmask 0  }
  0xf1   : > { %v4821_v30 = vpop.f32.mrb[4].mxu0  ;;  %v484_v33 = vsel %vm468_vm5, %v437_v27, %v476_v28 }
  0xf2   : > { %4443 = vmatmul.mubr.msk.f32.gmra.mrb[2].mxu1 %vm492_vm3, %v483_v29  ;;  %v447_v31 = vpop.f32.mrb[5].mxu0  ;;  %v479_v38 = vmul.f32 0.2, %v4821_v30  ;;  %vm471_vm8 = vcmp.ge.f32.partialorder %v4821_v30, 0.0 }
  0xf3   : > { %593 = vmatprep.mubr.f32.mxu1 %v6049_v20  ;;  %v478_v36 = vmul.f32 0.2, %v447_v31  ;;  %vm470_vm7 = vcmp.ge.f32.partialorder %v447_v31, 0.0 }
  0xf4   : > { %v487_v41 = vsel %vm471_vm8, %v4821_v30, %v479_v38 }
  0xf5   : > { %v4824_v34 = vpop.f32.mrb[6].mxu0  ;;  %v486_v39 = vsel %vm470_vm7, %v447_v31, %v478_v36 }
  0xf6   : > { %4444 = vmatmul.mubr.msk.f32.gmra.mrb[4].mxu1 %vm492_vm3, %v484_v33  ;;  %v457_v35 = vpop.f32.mrb[7].mxu0  ;;  %v481_v42 = vmul.f32 0.2, %v4824_v34  ;;  %vm473_vm10 = vcmp.ge.f32.partialorder %v4824_v34, 0.0 }
  0xf7   : > { %599 = vmatprep.mubr.f32.mxu1 %v6049_v20  ;;  %v480_v40 = vmul.f32 0.2, %v457_v35  ;;  %vm472_vm9 = vcmp.ge.f32.partialorder %v457_v35, 0.0 }
  0xf8   : > { %v489_v44 = vsel %vm473_vm10, %v4824_v34, %v481_v42 }
  0xf9   : > { %v488_v43 = vsel %vm472_vm9, %v457_v35, %v480_v40 }
  0xfa   : > { %4445 = vmatmul.mubr.msk.f32.gmra.mrb[6].mxu1 %vm492_vm3, %v485_v37 }
  0xfb   : > { %605 = vmatprep.mubr.f32.mxu1 %v6049_v20 }
  0xfe   : > { %4446 = vmatmul.mubr.msk.f32.gmra.mrb[8].mxu1 %vm492_vm3, %v486_v39 }
  0xff   : > { %611 = vmatprep.mubr.f32.mxu1 %v6049_v20 }
 0x102   : > { %4447 = vmatmul.mubr.msk.f32.gmra.mrb[10].mxu1 %vm492_vm3, %v487_v41 }
 0x103   : > { %617 = vmatprep.mubr.f32.mxu1 %v6049_v20 }
 0x106   : > { %4448 = vmatmul.mubr.msk.f32.gmra.mrb[12].mxu1 %vm492_vm3, %v488_v43  ;;  %v4465_v43 = vld [vmem:[%s6771_s4 + $0x48] sm:$0xff] }
 0x107   : > { %623 = vmatprep.mubr.f32.mxu1 %v6049_v20 }
 0x10a   : > { %4449 = vmatmul.mubr.msk.f32.gmra.mrb[14].mxu1 %vm492_vm3, %v489_v44  ;;  %v4468_v44 = vld [vmem:[%s6771_s4 + $0x50] sm:$0xff]  ;;  %vm4033_vm3 = vcmask 1043456  }
 0x10b   : > { %4841 = vmatprep.mubr.msk.f32.mxu1 %vm667_vm11, %v4450_v14 }
 0x1c1   : > { %v583_v45 = vpop.f32.mrb[0].mxu1 }
 0x1c2   : > { %v585_v46 = vpop.f32.mrb[1].mxu1 }
 0x1c5   : > { %v589_v47 = vpop.f32.mrb[2].mxu1 }
 0x1c6   : > { %v591_v48 = vpop.f32.mrb[3].mxu1  ;;  %v6173_v49 = vpack.i.bf16 %v589_v47, %v583_v45  ;;  %v6179_v52 = vpack.c.bf16 %v589_v47, %v583_v45 }
 0x1c7   : > { %v6175_v50 = vpack.i.bf16 %v591_v48, %v585_v46  ;;  %v6181_v53 = vpack.c.bf16 %v591_v48, %v585_v46 }
 0x1c8   : > { %5693 = vrot.lane.b32.xlu0 %v6173_v49, %s6050_s9 }
 0x1c9   : > { %v595_v51 = vpop.f32.mrb[4].mxu1 }
 0x1ca   : > { %v597_v54 = vpop.f32.mrb[5].mxu1 }
 0x1cd   : > { %v601_v55 = vpop.f32.mrb[6].mxu1 }
 0x1ce   : > { %v603_v56 = vpop.f32.mrb[7].mxu1  ;;  %v6183_v57 = vpack.i.bf16 %v601_v55, %v595_v51  ;;  %v6189_v60 = vpack.c.bf16 %v601_v55, %v595_v51 }
 0x1cf   : > { %v6185_v58 = vpack.i.bf16 %v603_v56, %v597_v54  ;;  %v6191_v61 = vpack.c.bf16 %v603_v56, %v597_v54 }
 0x1d0   : > { %5698 = vrot.lane.b32.xlu0 %v6183_v57, %s6050_s9 }
 0x1d1   : > { %v607_v59 = vpop.f32.mrb[8].mxu1 }
 0x1d2   : > { %v609_v62 = vpop.f32.mrb[9].mxu1 }
 0x1d4   : > { %5713 = vrot.lane.b32.xlu0 %v6173_v49, %s6051_s10 }
 0x1d5   : > { %v613_v63 = vpop.f32.mrb[10].mxu1 }
 0x1d6   : > { %v615_v0 = vpop.f32.mrb[11].mxu1  ;;  %v6195_v1 = vpack.i.bf16 %v613_v63, %v607_v59  ;;  %v6203_v4 = vpack.c.bf16 %v613_v63, %v607_v59 }
 0x1d7   : > { %v6197_v2 = vpack.i.bf16 %v615_v0, %v609_v62  ;;  %v6205_v6 = vpack.c.bf16 %v615_v0, %v609_v62 }
 0x1d8   : > { %5723 = vrot.lane.b32.xlu0 %v6195_v1, %s6051_s10  ;;  %5703 = vrot.lane.b32.xlu1 %v6195_v1, %s6050_s9 }
 0x1d9   : > { %v619_v3 = vpop.f32.mrb[12].mxu1 }
 0x1da   : > { %v621_v5 = vpop.f32.mrb[13].mxu1 }
 0x1dc   : > { %5733 = vrot.lane.b32.xlu0 %v6173_v49, %s6052_s11 }
 0x1dd   : > { %v625_v7 = vpop.f32.mrb[14].mxu1 }
 0x1de   : > { %v627_v9 = vpop.f32.mrb[15].mxu1  ;;  %v5707_v10 = vpack.i.bf16 %v625_v7, %v619_v3  ;;  %v6218_v12 = vpack.c.bf16 %v625_v7, %v619_v3  ;;  %v4469_v3 = vld [vmem:[%s6771_s4 + $0x58] sm:$0xff] }
 0x1df   : > { %v6213_v11 = vpack.i.bf16 %v627_v9, %v621_v5  ;;  %v6220_v13 = vpack.c.bf16 %v627_v9, %v621_v5  ;;  %v4472_v5 = vld [vmem:[%s6771_s4 + $0x60] sm:$0xff] }
 0x1e0   : > { %5743 = vrot.lane.b32.xlu0 %v6195_v1, %s6052_s11  ;;  %5708 = vrot.lane.b32.xlu1 %v5707_v10, %s6050_s9 }
 0x1e4   : > { %5753 = vrot.lane.b32.xlu0 %v6173_v49, %s6053_s14  ;;  %5718 = vrot.lane.b32.xlu1 %v6183_v57, %s6051_s10 }
 0x1e8   : > { %5763 = vrot.lane.b32.xlu0 %v6195_v1, %s6053_s14  ;;  %5728 = vrot.lane.b32.xlu1 %v5707_v10, %s6051_s10 }
 0x1ec   : > { %5773 = vrot.lane.b32.xlu0 %v6175_v50, %s6054_s15  ;;  %5738 = vrot.lane.b32.xlu1 %v6183_v57, %s6052_s11 }
 0x1f0   : > { %5783 = vrot.lane.b32.xlu0 %v6197_v2, %s6054_s15  ;;  %5748 = vrot.lane.b32.xlu1 %v5707_v10, %s6052_s11 }
 0x1f4   : > { %5793 = vrot.lane.b32.xlu0 %v6175_v50, %s6055_s16  ;;  %5758 = vrot.lane.b32.xlu1 %v6183_v57, %s6053_s14 }
 0x1f8   : > { %5803 = vrot.lane.b32.xlu0 %v6197_v2, %s6055_s16  ;;  %5768 = vrot.lane.b32.xlu1 %v5707_v10, %s6053_s14 }
 0x1fc   : > { %5813 = vrot.lane.b32.xlu0 %v6175_v50, %s6056_s17  ;;  %5778 = vrot.lane.b32.xlu1 %v6185_v58, %s6054_s15 }
 0x200   : > { %5823 = vrot.lane.b32.xlu0 %v6197_v2, %s6056_s17  ;;  %5788 = vrot.lane.b32.xlu1 %v6213_v11, %s6054_s15 }
 0x204   : > { %5828 = vrot.lane.b32.xlu0 %v6173_v49, %s6054_s15  ;;  %5798 = vrot.lane.b32.xlu1 %v6185_v58, %s6055_s16 }
 0x208   : > { %5843 = vrot.lane.b32.xlu0 %v6183_v57, %s6054_s15  ;;  %5808 = vrot.lane.b32.xlu1 %v6213_v11, %s6055_s16 }
 0x20c   : > { %5853 = vrot.lane.b32.xlu0 %v6195_v1, %s6054_s15  ;;  %5818 = vrot.lane.b32.xlu1 %v6185_v58, %s6056_s17 }
 0x210   : > { %5863 = vrot.lane.b32.xlu0 %v5707_v10, %s6054_s15  ;;  %5833 = vrot.lane.b32.xlu1 %v6213_v11, %s6056_s17 }
 0x214   : > { %5873 = vrot.lane.b32.xlu0 %v6175_v50, %s6051_s10  ;;  %5838 = vrot.lane.b32.xlu1 %v6175_v50, %s6050_s9 }
 0x218   : > { %5883 = vrot.lane.b32.xlu0 %v6197_v2, %s6051_s10  ;;  %5848 = vrot.lane.b32.xlu1 %v6185_v58, %s6050_s9 }
 0x21c   : > { %5888 = vrot.lane.b32.xlu0 %v6173_v49, %s6055_s16  ;;  %5858 = vrot.lane.b32.xlu1 %v6197_v2, %s6050_s9 }
 0x220   : > { %5903 = vrot.lane.b32.xlu0 %v6183_v57, %s6055_s16  ;;  %5868 = vrot.lane.b32.xlu1 %v6213_v11, %s6050_s9 }
 0x224   : > { %5913 = vrot.lane.b32.xlu0 %v6195_v1, %s6055_s16  ;;  %5878 = vrot.lane.b32.xlu1 %v6185_v58, %s6051_s10 }
 0x228   : > { %5923 = vrot.lane.b32.xlu0 %v5707_v10, %s6055_s16  ;;  %5893 = vrot.lane.b32.xlu1 %v6213_v11, %s6051_s10 }
 0x22c   : > { %5928 = vrot.lane.b32.xlu0 %v6173_v49, %s6056_s17  ;;  %5898 = vrot.lane.b32.xlu1 %v6175_v50, %s6052_s11 }
 0x230   : > { %5943 = vrot.lane.b32.xlu0 %v6183_v57, %s6056_s17  ;;  %5908 = vrot.lane.b32.xlu1 %v6185_v58, %s6052_s11 }
 0x234   : > { %5953 = vrot.lane.b32.xlu0 %v6195_v1, %s6056_s17  ;;  %5918 = vrot.lane.b32.xlu1 %v6197_v2, %s6052_s11 }
 0x238   : > { %5963 = vrot.lane.b32.xlu0 %v5707_v10, %s6056_s17  ;;  %5933 = vrot.lane.b32.xlu1 %v6213_v11, %s6052_s11 }
 0x23a   : > { %v5694_v15 = vpop.permute.xlu0 %5693 }
 0x23b   : > { %v5696_v16 = vunpack.i.h.bf16 %v5694_v15  ;;  %v5695_v17 = vunpack.i.l.bf16 %v5694_v15 }
 0x23c   : > { %5938 = vrot.lane.b32.xlu1 %v6175_v50, %s6053_s14 }
 0x23d   : > { %v5355_v18 = vpack.c.bf16 %v5696_v16, %v5695_v17 }
 0x23f   : > { %5356 = vmatprep.subr.bf16.mxu0 %v5355_v18 }
 0x240   : > { %5358 = vmatpush3.bf16.msra.mxu0 %v5355_v18  ;;  %5948 = vrot.lane.b32.xlu1 %v6185_v58, %s6053_s14 }
 0x242   : > { %v5699_v19 = vpop.permute.xlu0 %5698 }
 0x243   : > { %v5701_v21 = vunpack.i.h.bf16 %v5699_v19  ;;  %v5700_v22 = vunpack.i.l.bf16 %v5699_v19 }
 0x244   : > { %5958 = vrot.lane.b32.xlu1 %v6197_v2, %s6053_s14 }
 0x245   : > { %v5359_v23 = vpack.c.bf16 %v5701_v21, %v5700_v22 }
 0x246   : > { %v5714_v24 = vpop.permute.xlu0 %5713 }
 0x247   : > { %5360 = vmatprep.subr.bf16.mxu0 %v5359_v23  ;;  %v5716_v33 = vunpack.i.h.bf16 %v5714_v24  ;;  %v5715_v34 = vunpack.i.l.bf16 %v5714_v24 }
 0x248   : > { %5362 = vmatpush3.bf16.msra.mxu0 %v5359_v23  ;;  %5968 = vrot.lane.b32.xlu1 %v6213_v11, %s6053_s14 }
 0x249   : > { %v5371_v40 = vpack.c.bf16 %v5716_v33, %v5715_v34 }
 0x24a   : > { %v5724_v25 = vpop.permute.xlu0 %5723  ;;  %v5704_v26 = vpop.permute.xlu1 %5703 }
 0x24b   : > { %v5706_v27 = vunpack.i.h.bf16 %v5704_v26  ;;  %v5705_v28 = vunpack.i.l.bf16 %v5704_v26  ;;  %v5726_v46 = vunpack.i.h.bf16 %v5724_v25  ;;  %v5725_v47 = vunpack.i.l.bf16 %v5724_v25 }
 0x24d   : > { %v5363_v29 = vpack.c.bf16 %v5706_v27, %v5705_v28  ;;  %v5379_v51 = vpack.c.bf16 %v5726_v46, %v5725_v47 }
 0x24e   : > { %v5734_v30 = vpop.permute.xlu0 %5733 }
 0x24f   : > { %5364 = vmatprep.subr.bf16.mxu0 %v5363_v29  ;;  %v5736_v57 = vunpack.i.h.bf16 %v5734_v30  ;;  %v5735_v58 = vunpack.i.l.bf16 %v5734_v30  ;;  %v4473_v30 = vld [vmem:[%s6771_s4 + $0x68] sm:$0xff] }
 0x250   : > { %5366 = vmatpush3.bf16.msra.mxu0 %v5363_v29 }
 0x251   : > { %v5387_v0 = vpack.c.bf16 %v5736_v57, %v5735_v58  ;;  %v4451_v58 = vld [vmem:[%s6771_s4 + $0x18] sm:$0xff] }
 0x252   : > { %v5744_v31 = vpop.permute.xlu0 %5743  ;;  %v5709_v32 = vpop.permute.xlu1 %5708 }
 0x253   : > { %v5711_v35 = vunpack.i.h.bf16 %v5709_v32  ;;  %v5710_v36 = vunpack.i.l.bf16 %v5709_v32  ;;  %v5746_v8 = vunpack.i.h.bf16 %v5744_v31  ;;  %v5745_v9 = vunpack.i.l.bf16 %v5744_v31 }
 0x255   : > { %v5367_v37 = vpack.c.bf16 %v5711_v35, %v5710_v36  ;;  %v5395_v15 = vpack.c.bf16 %v5746_v8, %v5745_v9  ;;  %v4476_v35 = vld [vmem:[%s6771_s4 + $0x70] sm:$0xff] }
 0x256   : > { %v6316_v38 = vpop.permute.xlu0 %5753  ;;  %v5719_v39 = vpop.permute.xlu1 %5718 }
 0x257   : > { %v5721_v41 = vunpack.i.h.bf16 %v5719_v39  ;;  %v5720_v42 = vunpack.i.l.bf16 %v5719_v39  ;;  %5368 = vmatprep.subr.bf16.mxu0 %v5367_v37  ;;  %v5756_v18 = vunpack.i.h.bf16 %v6316_v38  ;;  %v5755_v19 = vunpack.i.l.bf16 %v6316_v38 }
 0x258   : > { %5370 = vmatpush3.bf16.msra.mxu0 %v5367_v37 }
 0x259   : > { %5372 = vmatprep.subr.bf16.mxu0 %v5371_v40  ;;  %v5375_v48 = vpack.c.bf16 %v5721_v41, %v5720_v42  ;;  %v5403_v24 = vpack.c.bf16 %v5756_v18, %v5755_v19 }
 0x25a   : > { %v6324_v45 = vpop.permute.xlu0 %5763  ;;  %v5729_v49 = vpop.permute.xlu1 %5728 }
 0x25b   : > { %4918 = vmatmul.mubr.msk.f32.vlgmr.msra.gmra.mrb[8].mxu0 %vm667_vm11, %v4465_v43  ;;  %v5731_v54 = vunpack.i.h.bf16 %v5729_v49  ;;  %v5730_v55 = vunpack.i.l.bf16 %v5729_v49  ;;  %v5766_v32 = vunpack.i.h.bf16 %v6324_v45  ;;  %v5765_v33 = vunpack.i.l.bf16 %v6324_v45 }
 0x25c   : > { %5374 = vmatpush3.bf16.msra.mxu0 %v5371_v40  ;;  %4936 = vmatprep.mubr.msk.f32.mxu0 %vm667_vm11, %v4468_v44 }
 0x25d   : > { %5376 = vmatprep.subr.bf16.mxu0 %v5375_v48  ;;  %v5383_v59 = vpack.c.bf16 %v5731_v54, %v5730_v55  ;;  %v5411_v41 = vpack.c.bf16 %v5766_v32, %v5765_v33 }
 0x25e   : > { %v6328_v50 = vpop.permute.xlu0 %5773  ;;  %v5739_v62 = vpop.permute.xlu1 %5738 }
 0x25f   : > { %v5741_v1 = vunpack.i.h.bf16 %v5739_v62  ;;  %v5740_v2 = vunpack.i.l.bf16 %v5739_v62 }
 0x260   : > { %5378 = vmatpush3.bf16.msra.mxu0 %v5375_v48 }
 0x261   : > { %5380 = vmatprep.subr.bf16.mxu0 %v5379_v51  ;;  %v5391_v10 = vpack.c.bf16 %v5741_v1, %v5740_v2  ;;  %v630_v1 = vld [vmem:[%s6771_s4] sm:$0xff] }
 0x262   : > { %v6330_v56 = vpop.permute.xlu0 %5783  ;;  %v5749_v11 = vpop.permute.xlu1 %5748  ;;  %v4480_v2 = vld [vmem:[%s6771_s4 + $0x80] sm:$0xff] }
 0x263   : > { %v5751_v16 = vunpack.i.h.bf16 %v5749_v11  ;;  %v5750_v17 = vunpack.i.l.bf16 %v5749_v11  ;;  %v5786_v19 = vunpack.i.h.bf16 %v6330_v56 }
 0x264   : > { %5382 = vmatpush3.bf16.msra.mxu0 %v5379_v51 }
 0x265   : > { %5384 = vmatprep.subr.bf16.mxu0 %v5383_v59  ;;  %v5399_v22 = vpack.c.bf16 %v5751_v16, %v5750_v17 }
 0x266   : > { %v6332_v63 = vpop.permute.xlu0 %5793  ;;  %v5759_v23 = vpop.permute.xlu1 %5758 }
 0x267   : > { %v5761_v26 = vunpack.i.h.bf16 %v5759_v23  ;;  %v5760_v27 = vunpack.i.l.bf16 %v5759_v23 }
 0x268   : > { %5386 = vmatpush3.bf16.msra.mxu0 %v5383_v59  ;;  %v4477_v59 = vld [vmem:[%s6771_s4 + $0x78] sm:$0xff] }
 0x269   : > { %5388 = vmatprep.subr.bf16.mxu0 %v5387_v0  ;;  %v5407_v36 = vpack.c.bf16 %v5761_v26, %v5760_v27  ;;  %v4484_v27 = vld [vmem:[%s6771_s4 + $0x90] sm:$0xff] }
 0x26a   : > { %v6340_v7 = vpop.permute.xlu0 %5803  ;;  %v5769_v39 = vpop.permute.xlu1 %5768 }
 0x26b   : > { %4937 = vmatmul.mubr.msk.f32.vlgmr.msra.gmra.mrb[8].mxu0 %vm667_vm11, %v4469_v3  ;;  %v5771_v43 = vunpack.i.h.bf16 %v5769_v39  ;;  %v5770_v44 = vunpack.i.l.bf16 %v5769_v39 }
 0x26c   : > { %5390 = vmatpush3.bf16.msra.mxu0 %v5387_v0  ;;  %4955 = vmatprep.mubr.msk.f32.mxu0 %vm667_vm11, %v4472_v5 }
 0x26d   : > { %5392 = vmatprep.subr.bf16.mxu0 %v5391_v10  ;;  %v5415_v49 = vpack.c.bf16 %v5771_v43, %v5770_v44 }
 0x26e   : > { %v6344_v14 = vpop.permute.xlu0 %5813  ;;  %v5779_v62 = vpop.permute.xlu1 %5778 }
 0x26f   : > { %v5780_v16 = vunpack.i.l.bf16 %v5779_v62 }
 0x270   : > { %5394 = vmatpush3.bf16.msra.mxu0 %v5391_v10 }
 0x271   : > { %5396 = vmatprep.subr.bf16.mxu0 %v5395_v15 }
 0x272   : > { %v6348_v21 = vpop.permute.xlu0 %5823  ;;  %v5789_v5 = vpop.permute.xlu1 %5788 }
 0x274   : > { %5398 = vmatpush3.bf16.msra.mxu0 %v5395_v15 }
 0x275   : > { %5400 = vmatprep.subr.bf16.mxu0 %v5399_v22 }
 0x276   : > { %v5829_v25 = vpop.permute.xlu0 %5828  ;;  %v6396_v11 = vpop.permute.xlu1 %5798 }
 0x277   : > { %v5831_v28 = vunpack.i.h.bf16 %v5829_v25  ;;  %v5830_v29 = vunpack.i.l.bf16 %v5829_v25  ;;  %v5801_v44 = vunpack.i.h.bf16 %v6396_v11 }
 0x278   : > { %5402 = vmatpush3.bf16.msra.mxu0 %v5399_v22  ;;  %v5785_v22 = vunpack.i.l.bf16 %v6330_v56 }
 0x279   : > { %v5291_v31 = vpack.c.bf16 %v5831_v28, %v5830_v29  ;;  %5404 = vmatprep.subr.bf16.mxu0 %v5403_v24  ;;  %v5791_v29 = vunpack.i.h.bf16 %v5789_v5 }
 0x27a   : > { %v5844_v34 = vpop.permute.xlu0 %5843  ;;  %v6416_v28 = vpop.permute.xlu1 %5808  ;;  %v5443_v56 = vpack.c.bf16 %v5786_v19, %v5785_v22  ;;  %v4489_v19 = vld [vmem:[%s6771_s4 + $0xa8] sm:$0xff]  ;;  %v4492_v22 = vld [vmem:[%s6771_s4 + $0xb0] sm:$0xff] }
 0x27b   : > { %v5846_v37 = vunpack.i.h.bf16 %v5844_v34  ;;  %v5845_v38 = vunpack.i.l.bf16 %v5844_v34  ;;  %5292 = vmatprep.subr.bf16.mxu1 %v5291_v31  ;;  %4956 = vmatmul.mubr.msk.f32.vlgmr.msra.gmra.mrb[8].mxu0 %vm667_vm11, %v4473_v30 }
 0x27c   : > { %5294 = vmatpush3.bf16.msra.mxu1 %v5291_v31  ;;  %5406 = vmatpush3.bf16.msra.mxu0 %v5403_v24  ;;  %v5790_v31 = vunpack.i.l.bf16 %v5789_v5  ;;  %v4460_v5 = vld [vmem:[%s6771_s4 + $0x30] sm:$0xff] }
 0x27d   : > { %v5295_v40 = vpack.c.bf16 %v5846_v37, %v5845_v38  ;;  %5408 = vmatprep.subr.bf16.mxu0 %v5407_v36  ;;  %4974 = vmatprep.mubr.msk.f32.mxu0 %vm667_vm11, %v4476_v35  ;;  %v5796_v35 = vunpack.i.h.bf16 %v6332_v63 }
 0x27e   : > { %v5854_v42 = vpop.permute.xlu0 %5853  ;;  %v6422_v37 = vpop.permute.xlu1 %5818  ;;  %v5447_v39 = vpack.c.bf16 %v5791_v29, %v5790_v31 }
 0x27f   : > { %v5856_v45 = vunpack.i.h.bf16 %v5854_v42  ;;  %v5855_v46 = vunpack.i.l.bf16 %v5854_v42  ;;  %5296 = vmatprep.subr.bf16.mxu1 %v5295_v40 }
 0x280   : > { %5298 = vmatpush3.bf16.msra.mxu1 %v5295_v40  ;;  %5410 = vmatpush3.bf16.msra.mxu0 %v5407_v36  ;;  %v5795_v36 = vunpack.i.l.bf16 %v6332_v63 }
 0x281   : > { %v5299_v47 = vpack.c.bf16 %v5856_v45, %v5855_v46  ;;  %5412 = vmatprep.subr.bf16.mxu0 %v5411_v41  ;;  %v5800_v46 = vunpack.i.l.bf16 %v6396_v11  ;;  %v5816_v11 = vunpack.i.h.bf16 %v6344_v14 }
 0x282   : > { %v5864_v48 = vpop.permute.xlu0 %5863  ;;  %v5451_v43 = vpack.c.bf16 %v5796_v35, %v5795_v36  ;;  %v4496_v35 = vld [vmem:[%s6771_s4 + $0xc0] sm:$0xff] }
 0x283   : > { %v5866_v51 = vunpack.i.h.bf16 %v5864_v48  ;;  %v5865_v54 = vunpack.i.l.bf16 %v5864_v48  ;;  %5300 = vmatprep.subr.bf16.mxu1 %v5299_v47 }
 0x284   : > { %5302 = vmatpush3.bf16.msra.mxu1 %v5299_v47  ;;  %5414 = vmatpush3.bf16.msra.mxu0 %v5411_v41 }
 0x285   : > { %v5303_v55 = vpack.c.bf16 %v5866_v51, %v5865_v54  ;;  %5416 = vmatprep.subr.bf16.mxu0 %v5415_v49  ;;  %v4457_v51 = vld [vmem:[%s6771_s4 + $0x28] sm:$0xff]  ;;  %v4485_v54 = vld [vmem:[%s6771_s4 + $0x98] sm:$0xff] }
 0x286   : > { %v6360_v57 = vpop.permute.xlu0 %5873 }
 0x287   : > { %5304 = vmatprep.subr.bf16.mxu1 %v5303_v55 }
 0x288   : > { %5306 = vmatpush3.bf16.msra.mxu1 %v5303_v55  ;;  %5418 = vmatpush3.bf16.msra.mxu0 %v5415_v49  ;;  %v6426_v49 = vpop.permute.xlu1 %5833  ;;  %v5806_v55 = vunpack.i.h.bf16 %v6340_v7 }
 0x289   : > { %5308 = vmatprep.subr.bf16.mxu1 %v6179_v52  ;;  %5420 = vmatprep.subr.bf16.mxu0 %v6181_v53 }
 0x28a   : > { %v6370_v0 = vpop.permute.xlu0 %5883 }
 0x28b   : > { %4842 = vmatmul.mubr.msk.f32.vlgmr.msra.gmra.mrb[16].mxu1 %vm667_vm11, %v4451_v58  ;;  %4975 = vmatmul.mubr.msk.f32.vlgmr.msra.gmra.mrb[8].mxu0 %vm667_vm11, %v4477_v59  ;;  %v5805_v58 = vunpack.i.l.bf16 %v6340_v7  ;;  %v5455_v59 = vpack.c.bf16 %v5801_v44, %v5800_v46  ;;  %v5876_v44 = vunpack.i.h.bf16 %v6360_v57 }
 0x28c   : > { %5310 = vmatpush3.bf16.msra.mxu1 %v6179_v52  ;;  %5422 = vmatpush3.bf16.msra.mxu0 %v6181_v53  ;;  %v5776_v52 = vunpack.i.h.bf16 %v6328_v50  ;;  %v5775_v53 = vunpack.i.l.bf16 %v6328_v50 }
 0x28d   : > { %5312 = vmatprep.subr.bf16.mxu1 %v6189_v60  ;;  %5424 = vmatprep.subr.bf16.mxu0 %v6191_v61  ;;  %v5459_v7 = vpack.c.bf16 %v5806_v55, %v5805_v58  ;;  %v5886_v55 = vunpack.i.h.bf16 %v6370_v0 }
 0x28e   : > { %v5889_v3 = vpop.permute.xlu0 %5888  ;;  %4860 = vmatprep.mubr.msk.f32.mxu1 %vm667_vm11, %v630_v1  ;;  %4993 = vmatprep.mubr.msk.f32.mxu0 %vm667_vm11, %v4480_v2 }
 0x28f   : > { %v5891_v9 = vunpack.i.h.bf16 %v5889_v3  ;;  %v5890_v10 = vunpack.i.l.bf16 %v5889_v3  ;;  %v4488_v3 = vld [vmem:[%s6771_s4 + $0xa0] sm:$0xff] }
 0x290   : > { %5314 = vmatpush3.bf16.msra.mxu1 %v6189_v60  ;;  %5426 = vmatpush3.bf16.msra.mxu0 %v6191_v61  ;;  %v5435_v60 = vpack.c.bf16 %v5776_v52, %v5775_v53  ;;  %v5781_v61 = vunpack.i.h.bf16 %v5779_v62  ;;  %v5811_v53 = vunpack.i.h.bf16 %v6416_v28 }
 0x291   : > { %5316 = vmatprep.subr.bf16.mxu1 %v6203_v4  ;;  %5428 = vmatprep.subr.bf16.mxu0 %v6205_v6  ;;  %v5323_v17 = vpack.c.bf16 %v5891_v9, %v5890_v10  ;;  %v5810_v9 = vunpack.i.l.bf16 %v6416_v28 }
 0x292   : > { %v5904_v8 = vpop.permute.xlu0 %5903  ;;  %v5439_v24 = vpack.c.bf16 %v5781_v61, %v5780_v16 }
 0x293   : > { %v5906_v18 = vunpack.i.h.bf16 %v5904_v8  ;;  %v5905_v50 = vunpack.i.l.bf16 %v5904_v8  ;;  %v5839_v8 = vpop.permute.xlu1 %5838  ;;  %v5463_v16 = vpack.c.bf16 %v5811_v53, %v5810_v9  ;;  %v4501_v9 = vld [vmem:[%s6771_s4 + $0xd8] sm:$0xff] }
 0x294   : > { %5318 = vmatpush3.bf16.msra.mxu1 %v6203_v4  ;;  %5430 = vmatpush3.bf16.msra.mxu0 %v6205_v6  ;;  %v631_v4 = vld [vmem:[%s6771_s4 + $0x8] sm:$0xff]  ;;  %v5841_v29 = vunpack.i.h.bf16 %v5839_v8 }
 0x295   : > { %5320 = vmatprep.subr.bf16.mxu1 %v6218_v12  ;;  %5432 = vmatprep.subr.bf16.mxu0 %v6220_v13  ;;  %v4481_v6 = vld [vmem:[%s6771_s4 + $0x88] sm:$0xff]  ;;  %v5327_v25 = vpack.c.bf16 %v5906_v18, %v5905_v50 }
 0x296   : > { %v5914_v15 = vpop.permute.xlu0 %5913 }
 0x297   : > { %v5915_v26 = vunpack.i.l.bf16 %v5914_v15  ;;  %v5849_v18 = vpop.permute.xlu1 %5848 }
 0x298   : > { %5322 = vmatpush3.bf16.msra.mxu1 %v6218_v12  ;;  %5434 = vmatpush3.bf16.msra.mxu0 %v6220_v13  ;;  %v5916_v12 = vunpack.i.h.bf16 %v5914_v15  ;;  %v4456_v13 = vld [vmem:[%s6771_s4 + $0x20] sm:$0xff]  ;;  %v5815_v15 = vunpack.i.l.bf16 %v6344_v14  ;;  %v4461_v14 = vld [vmem:[%s6771_s4 + $0x38] sm:$0xff] }
 0x299   : > { %5324 = vmatprep.subr.bf16.mxu1 %v5323_v17  ;;  %5436 = vmatprep.subr.bf16.mxu0 %v5435_v60 }
 0x29a   : > { %v5924_v23 = vpop.permute.xlu0 %5923  ;;  %v5331_v32 = vpack.c.bf16 %v5916_v12, %v5915_v26  ;;  %v5467_v50 = vpack.c.bf16 %v5816_v11, %v5815_v15 }
 0x29b   : > { %4861 = vmatmul.mubr.msk.f32.vlgmr.msra.gmra.mrb[16].mxu1 %vm667_vm11, %v631_v4  ;;  %4994 = vmatmul.mubr.msk.f32.vlgmr.msra.gmra.mrb[8].mxu0 %vm667_vm11, %v4481_v6  ;;  %v5926_v33 = vunpack.i.h.bf16 %v5924_v23  ;;  %v5925_v34 = vunpack.i.l.bf16 %v5924_v23  ;;  %v5821_v4 = vunpack.i.h.bf16 %v6422_v37  ;;  %v5820_v6 = vunpack.i.l.bf16 %v6422_v37  ;;  %v5859_v23 = vpop.permute.xlu1 %5858 }
 0x29c   : > { %5326 = vmatpush3.bf16.msra.mxu1 %v5323_v17  ;;  %5438 = vmatpush3.bf16.msra.mxu0 %v5435_v60  ;;  %v5861_v37 = vunpack.i.h.bf16 %v5859_v23 }
 0x29d   : > { %5328 = vmatprep.subr.bf16.mxu1 %v5327_v25  ;;  %5440 = vmatprep.subr.bf16.mxu0 %v5439_v24  ;;  %v5335_v40 = vpack.c.bf16 %v5926_v33, %v5925_v34  ;;  %v5471_v12 = vpack.c.bf16 %v5821_v4, %v5820_v6  ;;  %v5850_v33 = vunpack.i.l.bf16 %v5849_v18  ;;  %v4493_v34 = vld [vmem:[%s6771_s4 + $0xb8] sm:$0xff] }
 0x29e   : > { %v5929_v30 = vpop.permute.xlu0 %5928  ;;  %4879 = vmatprep.mubr.msk.f32.mxu1 %vm667_vm11, %v4456_v13  ;;  %5012 = vmatprep.mubr.msk.f32.mxu0 %vm667_vm11, %v4484_v27  ;;  %v5836_v13 = vunpack.i.h.bf16 %v6426_v49  ;;  %v5835_v27 = vunpack.i.l.bf16 %v6426_v49 }
 0x29f   : > { %v5931_v41 = vunpack.i.h.bf16 %v5929_v30  ;;  %v5930_v42 = vunpack.i.l.bf16 %v5929_v30  ;;  %v5869_v28 = vpop.permute.xlu1 %5868 }
 0x2a0   : > { %5330 = vmatpush3.bf16.msra.mxu1 %v5327_v25  ;;  %5442 = vmatpush3.bf16.msra.mxu0 %v5439_v24  ;;  %v5826_v24 = vunpack.i.h.bf16 %v6348_v21  ;;  %v5825_v25 = vunpack.i.l.bf16 %v6348_v21  ;;  %v5840_v21 = vunpack.i.l.bf16 %v5839_v8 }
 0x2a1   : > { %5332 = vmatprep.subr.bf16.mxu1 %v5331_v32  ;;  %5444 = vmatprep.subr.bf16.mxu0 %v5443_v56  ;;  %v5339_v47 = vpack.c.bf16 %v5931_v41, %v5930_v42  ;;  %v5871_v41 = vunpack.i.h.bf16 %v5869_v28  ;;  %v5870_v42 = vunpack.i.l.bf16 %v5869_v28 }
 0x2a2   : > { %v5944_v38 = vpop.permute.xlu0 %5943  ;;  %v5475_v26 = vpack.c.bf16 %v5826_v24, %v5825_v25  ;;  %v5483_v31 = vpack.c.bf16 %v5841_v29, %v5840_v21  ;;  %v4505_v25 = vld [vmem:[%s6771_s4 + $0xe8] sm:$0xff] }
 0x2a3   : > { %v5946_v48 = vunpack.i.h.bf16 %v5944_v38  ;;  %v5945_v63 = vunpack.i.l.bf16 %v5944_v38  ;;  %v5879_v30 = vpop.permute.xlu1 %5878  ;;  %v5860_v38 = vunpack.i.l.bf16 %v5859_v23  ;;  %v5495_v46 = vpack.c.bf16 %v5871_v41, %v5870_v42 }
 0x2a4   : > { %5334 = vmatpush3.bf16.msra.mxu1 %v5331_v32  ;;  %5446 = vmatpush3.bf16.msra.mxu0 %v5443_v56  ;;  %v5479_v56 = vpack.c.bf16 %v5836_v13, %v5835_v27  ;;  %v5851_v32 = vunpack.i.h.bf16 %v5849_v18 }
 0x2a5   : > { %5336 = vmatprep.subr.bf16.mxu1 %v5335_v40  ;;  %5448 = vmatprep.subr.bf16.mxu0 %v5447_v39  ;;  %v5343_v62 = vpack.c.bf16 %v5946_v48, %v5945_v63  ;;  %v5881_v48 = vunpack.i.h.bf16 %v5879_v30  ;;  %v5880_v63 = vunpack.i.l.bf16 %v5879_v30 }
 0x2a6   : > { %v5954_v45 = vpop.permute.xlu0 %5953  ;;  %v5487_v36 = vpack.c.bf16 %v5851_v32, %v5850_v33 }
 0x2a7   : > { %v5956_v1 = vunpack.i.h.bf16 %v5954_v45  ;;  %v5955_v2 = vunpack.i.l.bf16 %v5954_v45  ;;  %v5875_v45 = vunpack.i.l.bf16 %v6360_v57  ;;  %v5885_v57 = vunpack.i.l.bf16 %v6370_v0 }
 0x2a8   : > { %5338 = vmatpush3.bf16.msra.mxu1 %v5335_v40  ;;  %5450 = vmatpush3.bf16.msra.mxu0 %v5447_v39  ;;  %v5894_v39 = vpop.permute.xlu1 %5893  ;;  %v5491_v40 = vpack.c.bf16 %v5861_v37, %v5860_v38  ;;  %v5503_v58 = vpack.c.bf16 %v5881_v48, %v5880_v63  ;;  %v6059_v48 = vmov 0.0625   ;;  %v2354_v63 = vld [vmem:[%s6774_s7] sm:$0x1f] }
 0x2a9   : > { %5340 = vmatprep.subr.bf16.mxu1 %v5339_v47  ;;  %5452 = vmatprep.subr.bf16.mxu0 %v5451_v43  ;;  %v5347_v10 = vpack.c.bf16 %v5956_v1, %v5955_v2  ;;  %v5896_v1 = vunpack.i.h.bf16 %v5894_v39  ;;  %v5895_v2 = vunpack.i.l.bf16 %v5894_v39 }
 0x2aa   : > { %v5964_v52 = vpop.permute.xlu0 %5963 }
 0x2ab   : > { %4880 = vmatmul.mubr.msk.f32.vlgmr.msra.gmra.mrb[16].mxu1 %vm667_vm11, %v4457_v51  ;;  %5013 = vmatmul.mubr.msk.f32.vlgmr.msra.gmra.mrb[8].mxu0 %vm667_vm11, %v4485_v54  ;;  %v5966_v60 = vunpack.i.h.bf16 %v5964_v52  ;;  %v5965_v61 = vunpack.i.l.bf16 %v5964_v52  ;;  %v4497_v51 = vld [vmem:[%s6771_s4 + $0xc8] sm:$0xff]  ;;  %v4500_v54 = vld [vmem:[%s6771_s4 + $0xd0] sm:$0xff] }
 0x2ac   : > { %5342 = vmatpush3.bf16.msra.mxu1 %v5339_v47  ;;  %5454 = vmatpush3.bf16.msra.mxu0 %v5451_v43  ;;  %v5899_v43 = vpop.permute.xlu1 %5898  ;;  %v5499_v47 = vpack.c.bf16 %v5876_v44, %v5875_v45 }
 0x2ad   : > { %5344 = vmatprep.subr.bf16.mxu1 %v5343_v62  ;;  %5456 = vmatprep.subr.bf16.mxu0 %v5455_v59  ;;  %v5351_v17 = vpack.c.bf16 %v5966_v60, %v5965_v61  ;;  %v5900_v52 = vunpack.i.l.bf16 %v5899_v43 }
 0x2ae   : > { %5031 = vmatprep.mubr.msk.f32.mxu0 %vm667_vm11, %v4488_v3  ;;  %4898 = vmatprep.mubr.msk.f32.mxu1 %vm667_vm11, %v4460_v5  ;;  %v5511_v3 = vpack.c.bf16 %v5896_v1, %v5895_v2  ;;  %v5901_v5 = vunpack.i.h.bf16 %v5899_v43 }
 0x2b0   : > { %5346 = vmatpush3.bf16.msra.mxu1 %v5343_v62  ;;  %5458 = vmatpush3.bf16.msra.mxu0 %v5455_v59  ;;  %v5909_v49 = vpop.permute.xlu1 %5908  ;;  %v5507_v62 = vpack.c.bf16 %v5886_v55, %v5885_v57  ;;  %v5515_v0 = vpack.c.bf16 %v5901_v5, %v5900_v52 }
 0x2b1   : > { %5348 = vmatprep.subr.bf16.mxu1 %v5347_v10  ;;  %5460 = vmatprep.subr.bf16.mxu0 %v5459_v7  ;;  %v5911_v53 = vunpack.i.h.bf16 %v5909_v49  ;;  %v5910_v8 = vunpack.i.l.bf16 %v5909_v49  ;;  %v6531_v49 = vld [vmem:[%s312_s24] sm:$0x1] }
 0x2b3   : > { %v5519_v61 = vpack.c.bf16 %v5911_v53, %v5910_v8  ;;  %v2565_v53 = vld [vmem:[%s6772_s5 + $0x28] sm:$0xff] }
 0x2b4   : > { %5350 = vmatpush3.bf16.msra.mxu1 %v5347_v10  ;;  %5462 = vmatpush3.bf16.msra.mxu0 %v5459_v7  ;;  %v5919_v59 = vpop.permute.xlu1 %5918  ;;  %v4504_v10 = vld [vmem:[%s6771_s4 + $0xe0] sm:$0xff] }
 0x2b5   : > { %5352 = vmatprep.subr.bf16.mxu1 %v5351_v17  ;;  %5464 = vmatprep.subr.bf16.mxu0 %v5463_v16  ;;  %v5921_v11 = vunpack.i.h.bf16 %v5919_v59  ;;  %v5920_v15 = vunpack.i.l.bf16 %v5919_v59 }
 0x2b8   : > { %5354 = vmatpush3.bf16.msra.mxu1 %v5351_v17  ;;  %5466 = vmatpush3.bf16.msra.mxu0 %v5463_v16  ;;  %v5934_v7 = vpop.permute.xlu1 %5933  ;;  %v5523_v16 = vpack.c.bf16 %v5921_v11, %v5920_v15 }
 0x2b9   : > { %5468 = vmatprep.subr.bf16.mxu0 %v5467_v50  ;;  %v5936_v17 = vunpack.i.h.bf16 %v5934_v7  ;;  %v5935_v18 = vunpack.i.l.bf16 %v5934_v7  ;;  %v2538_v7 = vlaneseq }
 0x2bb   : > { %5032 = vmatmul.mubr.msk.f32.vlgmr.msra.gmra.mrb[8].mxu0 %vm667_vm11, %v4489_v19  ;;  %4899 = vmatmul.mubr.msk.f32.vlgmr.msra.gmra.mrb[16].mxu1 %vm667_vm11, %v4461_v14  ;;  %v5527_v4 = vpack.c.bf16 %v5936_v17, %v5935_v18  ;;  %v2563_v17 = vld [vmem:[%s6772_s5 + $0x18] sm:$0xff] }
 0x2bc   : > { %5470 = vmatpush3.bf16.msra.mxu0 %v5467_v50  ;;  %5050 = vmatprep.mubr.msk.f32.mxu0 %vm667_vm11, %v4492_v22  ;;  %v5939_v60 = vpop.permute.xlu1 %5938  ;;  %v2567_v18 = vld [vmem:[%s6772_s5 + $0x38] sm:$0xff] }
 0x2bd   : > { %5472 = vmatprep.subr.bf16.mxu0 %v5471_v12  ;;  %v5941_v6 = vunpack.i.h.bf16 %v5939_v60  ;;  %v5940_v19 = vunpack.i.l.bf16 %v5939_v60  ;;  %5133 = vmatprep.mubr.msk.f32.mxu1 %vm6058_vm12, %v6049_v20 }
 0x2bf   : > { %v5531_v22 = vpack.c.bf16 %v5941_v6, %v5940_v19 }
 0x2c0   : > { %5474 = vmatpush3.bf16.msra.mxu0 %v5471_v12  ;;  %v5949_v50 = vpop.permute.xlu1 %5948  ;;  %v4508_v12 = vld [vmem:[%s6771_s4 + $0xf0] sm:$0xff] }
 0x2c1   : > { %5476 = vmatprep.subr.bf16.mxu0 %v5475_v26  ;;  %v5951_v23 = vunpack.i.h.bf16 %v5949_v50  ;;  %v5950_v24 = vunpack.i.l.bf16 %v5949_v50  ;;  %v5554_v50 = vpack.c.bf16 %v2567_v18, %v2563_v17 }
 0x2c4   : > { %5478 = vmatpush3.bf16.msra.mxu0 %v5475_v26  ;;  %v5959_v14 = vpop.permute.xlu1 %5958  ;;  %v5535_v26 = vpack.c.bf16 %v5951_v23, %v5950_v24  ;;  %v2562_v23 = vld [vmem:[%s6772_s5 + $0x10] sm:$0xff] }
 0x2c5   : > { %5480 = vmatprep.subr.bf16.mxu0 %v5479_v56  ;;  %v5961_v13 = vunpack.i.h.bf16 %v5959_v14  ;;  %v5960_v27 = vunpack.i.l.bf16 %v5959_v14  ;;  %v2566_v24 = vld [vmem:[%s6772_s5 + $0x30] sm:$0xff] }
 0x2c8   : > { %5482 = vmatpush3.bf16.msra.mxu0 %v5479_v56  ;;  %v5969_v28 = vpop.permute.xlu1 %5968  ;;  %v5539_v56 = vpack.c.bf16 %v5961_v13, %v5960_v27  ;;  %v5556_v13 = vpack.c.bf16 %v2566_v24, %v2562_v23  ;;  %v4534_v23 = vld [vmem:[%s6773_s6 + $0x20] sm:$0xf] }
 0x2c9   : > { %5484 = vmatprep.subr.bf16.mxu0 %v5483_v31  ;;  %v5971_v29 = vunpack.i.h.bf16 %v5969_v28  ;;  %v5970_v21 = vunpack.i.l.bf16 %v5969_v28 }
 0x2cb   : > { %5051 = vmatmul.mubr.msk.f32.vlgmr.msra.gmra.mrb[8].mxu0 %vm667_vm11, %v4493_v34  ;;  %v5543_v30 = vpack.c.bf16 %v5971_v29, %v5970_v21  ;;  %v6057_v34 = vmov 0.0|0.0  }
 0x2cc   : > { %5486 = vmatpush3.bf16.msra.mxu0 %v5483_v31  ;;  %5069 = vmatprep.mubr.msk.f32.mxu0 %vm667_vm11, %v4496_v35  ;;  %v4509_v31 = vld [vmem:[%s6771_s4 + $0xf8] sm:$0xff] }
 0x2cd   : > { %5488 = vmatprep.subr.bf16.mxu0 %v5487_v36  ;;  %5547 = vmatprep.subr.bf16.mxu1 %v6057_v34 }
 0x2d0   : > { %5490 = vmatpush3.bf16.msra.mxu0 %v5487_v36 }
 0x2d1   : > { %5492 = vmatprep.subr.bf16.mxu0 %v5491_v40 }
 0x2d4   : > { %5494 = vmatpush3.bf16.msra.mxu0 %v5491_v40 }
 0x2d5   : > { %5496 = vmatprep.subr.bf16.mxu0 %v5495_v46 }
 0x2d8   : > { %5498 = vmatpush3.bf16.msra.mxu0 %v5495_v46 }
 0x2d9   : > { %5500 = vmatprep.subr.bf16.mxu0 %v5499_v47 }
 0x2db   : > { %5070 = vmatmul.mubr.msk.f32.vlgmr.msra.gmra.mrb[8].mxu0 %vm667_vm11, %v4497_v51 }
 0x2dc   : > { %5502 = vmatpush3.bf16.msra.mxu0 %v5499_v47  ;;  %5088 = vmatprep.mubr.msk.f32.mxu0 %vm667_vm11, %v4500_v54 }
 0x2dd   : > { %5504 = vmatprep.subr.bf16.mxu0 %v5503_v58 }
 0x2e0   : > { %5506 = vmatpush3.bf16.msra.mxu0 %v5503_v58 }
 0x2e1   : > { %5508 = vmatprep.subr.bf16.mxu0 %v5507_v62 }
 0x2e4   : > { %5510 = vmatpush3.bf16.msra.mxu0 %v5507_v62 }
 0x2e5   : > { %5512 = vmatprep.subr.bf16.mxu0 %v5511_v3 }
 0x2e8   : > { %5514 = vmatpush3.bf16.msra.mxu0 %v5511_v3 }
 0x2e9   : > { %5516 = vmatprep.subr.bf16.mxu0 %v5515_v0 }
 0x2eb   : > { %5089 = vmatmul.mubr.msk.f32.vlgmr.msra.gmra.mrb[8].mxu0 %vm667_vm11, %v4501_v9  ;;  %v2560_v9 = vld [vmem:[%s6772_s5] sm:$0xff] }
 0x2ec   : > { %5518 = vmatpush3.bf16.msra.mxu0 %v5515_v0  ;;  %5107 = vmatprep.mubr.msk.f32.mxu0 %vm667_vm11, %v4504_v10  ;;  %v2561_v0 = vld [vmem:[%s6772_s5 + $0x8] sm:$0xff]  ;;  %v2564_v10 = vld [vmem:[%s6772_s5 + $0x20] sm:$0xff] }
 0x2ed   : > { %5520 = vmatprep.subr.bf16.mxu0 %v5519_v61  ;;  %v5550_v8 = vpack.c.bf16 %v2565_v53, %v2561_v0  ;;  %v5552_v60 = vpack.c.bf16 %v2564_v10, %v2560_v9  ;;  %v4526_v53 = vld [vmem:[%s6773_s6 + $0x10] sm:$0xf] }
 0x2f0   : > { %5522 = vmatpush3.bf16.msra.mxu0 %v5519_v61  ;;  %v2539_v61 = vshrl.u32 %v2538_v7, 7 }
 0x2f1   : > { %5524 = vmatprep.subr.bf16.mxu0 %v5523_v16 }
 0x2f2   : > { %v6551_v15 = vsub.s32 0, %v2539_v61  ;;  %v4528_v61 = vld [vmem:[%s6773_s6 + $0x14] sm:$0xf] }
 0x2f4   : > { %5526 = vmatpush3.bf16.msra.mxu0 %v5523_v16 }
 0x2f5   : > { %5528 = vmatprep.subr.bf16.mxu0 %v5527_v4 }
 0x2f8   : > { %5530 = vmatpush3.bf16.msra.mxu0 %v5527_v4 }
 0x2f9   : > { %5532 = vmatprep.subr.bf16.mxu0 %v5531_v22 }
 0x2fb   : > { %5108 = vmatmul.mubr.msk.f32.vlgmr.msra.gmra.mrb[8].mxu0 %vm667_vm11, %v4505_v25 }
 0x2fc   : > { %5534 = vmatpush3.bf16.msra.mxu0 %v5531_v22  ;;  %5126 = vmatprep.mubr.msk.f32.mxu0 %vm667_vm11, %v4508_v12 }
 0x2fd   : > { %5536 = vmatprep.subr.bf16.mxu0 %v5535_v26 }
 0x300   : > { %5538 = vmatpush3.bf16.msra.mxu0 %v5535_v26 }
 0x301   : > { %5540 = vmatprep.subr.bf16.mxu0 %v5539_v56 }
 0x304   : > { %5542 = vmatpush3.bf16.msra.mxu0 %v5539_v56 }
 0x305   : > { %5544 = vmatprep.subr.bf16.mxu0 %v5543_v30 }
 0x308   : > { %5546 = vmatpush3.bf16.msra.mxu0 %v5543_v30 }
 0x30b   : > { %5127 = vmatmul.mubr.msk.f32.vlgmr.msra.gmra.mrb[8].mxu0 %vm667_vm11, %v4509_v31 }
 0x38e   : > { %v4900_v32 = vpop.f32.mrb[16].mxu1 }
 0x38f   : > { %v1039_v33 = vpop.f32.mrb[17].mxu1 }
 0x3de   : > { %v5128_v35 = vpop.f32.mrb[8].mxu0 }
 0x3df   : > { %v6509_v36 = vadd.f32 %v5128_v35, %v4900_v32  ;;  %v2343_v37 = vpop.f32.mrb[9].mxu0 }
 0x3e0   : > { %v5611_v38 = vadd.f32 %v2343_v37, %v1039_v33 }
 0x3e1   : > { %v2356_v39 = vmul.f32 %v6509_v36, %v6509_v36 }
 0x3e2   : > { %v2355_v40 = vmul.f32 %v5611_v38, %v5611_v38 }
 0x3e4   : > { %v5972_v41 = vpack.i.bf16 %v2356_v39, %v2355_v40 }
 0x3e6   : > { %5973 = vrot.lane.b32.xlu0 %v5972_v41, %s6053_s14 }
 0x458   : > { %v5974_v42 = vpop.permute.xlu0 %5973 }
 0x459   : > { %v5976_v43 = vunpack.i.h.bf16 %v5974_v42  ;;  %v5975_v44 = vunpack.i.l.bf16 %v5974_v42 }
 0x45b   : > { %v2367_v45 = vsel %vm2365_vm13, %v6509_v36, %v5976_v43  ;;  %v2366_v46 = vsel %vm2365_vm13, %v5611_v38, %v5975_v44 }
 0x45c   : > { %v5548_v47 = vpack.c.bf16 %v2367_v45, %v2366_v46 }
 0x45e   : > { %5549 = vmatpush3.bf16.msra.mxu1 %v5548_v47 }
 0x45f   : > { %5136 = vmatprep.subr.mxu1 %v6049_v20 }
 0x461   : > { %5134 = vmatmul.mubr.msk.f32.vlgmr.msra.gmra.mrb[18].mxu1 %vm2365_vm13, %v6059_v48 }
 0x462   : > { %5138 = vmatprep.mubr.msk.f32.mxu1 %vm6058_vm12, %v6049_v20  ;;  %5137 = vmatpush3.msk.msra.mxu1 %vm2451_vm14, %v2354_v63  ;;  %v4519_v63 = vld [vmem:[%s6773_s6 + $0x4] sm:$0xf] }
 0x463   : > { %5551 = vmatprep.subr.bf16.mxu1 %v5550_v8 }
 0x465   : > { %5139 = vmatmul.mubr.msk.f32.vlgmr.msra.gmra.mrb[20].mxu1 %vm2447_vm15, %v6531_v49 }
 0x466   : > { %2638 = vmatprep.mubr.f32.mxu1 %v6049_v20  ;;  %5553 = vmatpush1.bf16.msra.mxu1 %v5552_v60 }
 0x467   : > { %5555 = vmatprep.subr.bf16.mxu1 %v5554_v50  ;;  %v4530_v50 = vld [vmem:[%s6773_s6 + $0x18] sm:$0xf] }
 0x534   : > { %v2437_v51 = vpop.f32.mrb[18].mxu1 }
 0x535   : > { %v2441_v54 = vmul.f32 %v2437_v51, %v2437_v51  ;;  %v5135_v55 = vpop.f32.mrb[19].mxu1 }
 0x537   : > { %2443 = vrot.lane.b32.xlu1 %v2441_v54, %s6053_s14 }
 0x538   : > { %v2521_v57 = vpop.f32.mrb[20].mxu1 }
 0x539   : > { %v5140_v58 = vpop.f32.mrb[21].mxu1 }
 0x5a9   : > { %v2444_v59 = vpop.permute.xlu1 %2443 }
 0x5aa   : > { %v2446_v62 = vsub.f32 %v2437_v51, %v2444_v59 }
 0x5ac   : > { %v2525_v1 = vadd.f32 1e-05, %v2446_v62 }
 0x5ae   : > { %6037 = vrsqrt.f32 %v2525_v1 }
 0x5b8   : > { %v6038_v2 = vpop.eup %6037 }
 0x5b9   : > { %2528 = vrot.lane.b32.xlu0 %v6038_v2, %s6054_s15  ;;  %v4522_v2 = vld [vmem:[%s6773_s6 + $0x8] sm:$0xf] }
 0x62b   : > { %v2529_v3 = vpop.permute.xlu0 %2528 }
 0x62c   : > { %v2531_v5 = vmul.f32 %v2529_v3, %v2521_v57 }
 0x62e   : > { %v2532_v52 = vmul.f32 %v2531_v5, %v2437_v51  ;;  %v2541_v6 = vrot.slane %v2531_v5, %v6551_v15  ;;  %v4524_v5 = vld [vmem:[%s6773_s6 + $0xc] sm:$0xf] }
 0x630   : > { %2534 = vrot.lane.b32.xlu1 %v2532_v52, %s6053_s14  ;;  %v2542_v19 = vmul.f32 %v5611_v38, %v2541_v6  ;;  %v2543_v14 = vmul.f32 %v6509_v36, %v2541_v6  ;;  %v4532_v6 = vld [vmem:[%s6773_s6 + $0x1c] sm:$0xf] }
 0x6a2   : > { %v2535_v11 = vpop.permute.xlu1 %2534 }
 0x6a3   : > { %v2537_v16 = vsub.f32 %v2521_v57, %v2535_v11  ;;  %v2728_v57 = vld [vmem:[%s6773_s6] sm:$0xf] }
 0x6a5   : > { %v2547_v4 = vrot.slane %v2537_v16, %v6551_v15 }
 0x6a7   : > { %2549 = vrot.lane.b32.xlu0 %v2547_v4, %s6054_s15 }
 0x719   : > { %v2550_v22 = vpop.permute.xlu0 %2549 }
 0x71a   : > { %v2552_v25 = vadd.f32 %v2550_v22, %v2542_v19  ;;  %v2553_v12 = vadd.f32 %v2550_v22, %v2543_v14 }
 0x71c   : > { %vm2554_vm0 = vcmp.ge.f32.partialorder %v2552_v25, 0.0  ;;  %v2556_v26 = vmul.f32 0.2, %v2552_v25  ;;  %v2557_v27 = vmul.f32 0.2, %v2553_v12  ;;  %vm2555_vm1 = vcmp.ge.f32.partialorder %v2553_v12, 0.0 }
 0x71e   : > { %v2558_v28 = vsel %vm2554_vm0, %v2552_v25, %v2556_v26  ;;  %v2559_v56 = vsel %vm2555_vm1, %v2553_v12, %v2557_v27 }
 0x71f   : > { %4515 = vmatmul.mubr.msk.f32.vlgmr.msra.gmra.mrb[22].mxu1 %vm2365_vm13, %v2558_v28 }
 0x720   : > { %2644 = vmatprep.mubr.f32.mxu1 %v6049_v20  ;;  %5557 = vmatpush1.bf16.msra.mxu1 %v5556_v13  ;;  %v4536_v13 = vld [vmem:[%s6773_s6 + $0x24] sm:$0xf] }
 0x721   : > { %5558 = vmatprep.subr.bf16.mxu1 %v6057_v34 }
 0x723   : > { %4516 = vmatmul.mubr.msk.f32.gmra.mrb[24].mxu1 %vm2365_vm13, %v2559_v56 }
 0x724   : > { %2715 = vmatprep.mubr.f32.mxu1 %v6049_v20 }
 0x727   : > { %4517 = vmatmul.mubr.msk.f32.vlgmr.msra.gmra.mrb[26].mxu1 %vm2365_vm13, %v2558_v28 }
 0x728   : > { %2721 = vmatprep.mubr.f32.mxu1 %v6049_v20 }
 0x72b   : > { %4518 = vmatmul.mubr.msk.f32.gmra.mrb[28].mxu1 %vm2365_vm13, %v2559_v56 }
 0x72c   : > { %5145 = vmatprep.mubr.msk.f32.mxu1 %vm6058_vm12, %v6049_v20 }
 0x7f2   : > { %v2640_v29 = vpop.f32.mrb[22].mxu1 }
 0x7f3   : > { %v2642_v21 = vpop.f32.mrb[23].mxu1 }
 0x7f6   : > { %v2646_v30 = vpop.f32.mrb[24].mxu1 }
 0x7f7   : > { %v5562_v31 = vpack.c.bf16 %v2646_v30, %v2640_v29  ;;  %v2648_v32 = vpop.f32.mrb[25].mxu1  ;;  %v5982_v33 = vpack.i.bf16 %v2646_v30, %v2640_v29 }
 0x7f8   : > { %v5571_v35 = vpack.c.bf16 %v2648_v32, %v2642_v21  ;;  %v5992_v36 = vpack.i.bf16 %v2648_v32, %v2642_v21  ;;  %v4538_v21 = vld [vmem:[%s6773_s6 + $0x28] sm:$0xf] }
 0x7f9   : > { %5983 = vrot.lane.b32.xlu0 %v5982_v33, %s6050_s9  ;;  %5978 = vrot.lane.b32.xlu1 %v5982_v33, %s6055_s16 }
 0x7fa   : > { %v6581_v37 = vpop.f32.mrb[26].mxu1 }
 0x7fb   : > { %v6583_v38 = vpop.f32.mrb[27].mxu1 }
 0x7fd   : > { %5988 = vrot.lane.b32.xlu1 %v5982_v33, %s6052_s11  ;;  %5993 = vrot.lane.b32.xlu0 %v5992_v36, %s6055_s16 }
 0x7fe   : > { %v6587_v39 = vpop.f32.mrb[28].mxu1 }
 0x7ff   : > { %v5583_v40 = vpack.c.bf16 %v6587_v39, %v6581_v37  ;;  %v6591_v41 = vpop.f32.mrb[29].mxu1  ;;  %v6012_v42 = vpack.i.bf16 %v6587_v39, %v6581_v37 }
 0x800   : > { %v5595_v43 = vpack.c.bf16 %v6591_v41, %v6583_v38  ;;  %v6022_v44 = vpack.i.bf16 %v6591_v41, %v6583_v38  ;;  %v4544_v41 = vld [vmem:[%s6773_s6 + $0x34] sm:$0xf] }
 0x801   : > { %5998 = vrot.lane.b32.xlu1 %v5992_v36, %s6050_s9  ;;  %6003 = vrot.lane.b32.xlu0 %v5992_v36, %s6052_s11  ;;  %v4542_v36 = vld [vmem:[%s6773_s6 + $0x30] sm:$0xf] }
 0x805   : > { %6013 = vrot.lane.b32.xlu0 %v6012_v42, %s6050_s9  ;;  %6008 = vrot.lane.b32.xlu1 %v6012_v42, %s6055_s16 }
 0x809   : > { %6018 = vrot.lane.b32.xlu1 %v6012_v42, %s6052_s11  ;;  %6023 = vrot.lane.b32.xlu0 %v6022_v44, %s6055_s16 }
 0x80d   : > { %6028 = vrot.lane.b32.xlu1 %v6022_v44, %s6050_s9  ;;  %6033 = vrot.lane.b32.xlu0 %v6022_v44, %s6052_s11  ;;  %s315_s9 = scalar_lea.vmem %s6775_s8, %s6777_s28 }
 0x86b   : > { %v5979_v45 = vpop.permute.xlu1 %5978  ;;  %v5984_v51 = vpop.permute.xlu0 %5983 }
 0x86c   : > { %v5981_v46 = vunpack.i.h.bf16 %v5979_v45  ;;  %v5980_v47 = vunpack.i.l.bf16 %v5979_v45  ;;  %v5986_v54 = vunpack.i.h.bf16 %v5984_v51  ;;  %v5985_v55 = vunpack.i.l.bf16 %v5984_v51 }
 0x86e   : > { %v5559_v48 = vpack.c.bf16 %v5981_v46, %v5980_v47  ;;  %v5565_v58 = vpack.c.bf16 %v5986_v54, %v5985_v55  ;;  %v4546_v46 = vld [vmem:[%s6773_s6 + $0x38] sm:$0xf] }
 0x86f   : > { %v5989_v59 = vpop.permute.xlu1 %5988  ;;  %v5994_v52 = vpop.permute.xlu0 %5993 }
 0x870   : > { %5560 = vmatpush3.bf16.msra.mxu1 %v5559_v48  ;;  %v5991_v62 = vunpack.i.h.bf16 %v5989_v59  ;;  %v5990_v1 = vunpack.i.l.bf16 %v5989_v59  ;;  %v5996_v7 = vunpack.i.h.bf16 %v5994_v52  ;;  %v5995_v0 = vunpack.i.l.bf16 %v5994_v52  ;;  %v4548_v48 = vld [vmem:[%s6773_s6 + $0x3c] sm:$0xf]  ;;  %v4021_v59 = vld [vmem:[%s6774_s7 + $0x5] sm:$0x1f] }
 0x871   : > { %5561 = vmatprep.subr.bf16.mxu1 %v6057_v34 }
 0x872   : > { %v5568_v3 = vpack.c.bf16 %v5991_v62, %v5990_v1  ;;  %v5574_v8 = vpack.c.bf16 %v5996_v7, %v5995_v0 }
 0x873   : > { %5146 = vmatmul.mubr.msk.f32.vlgmr.msra.gmra.mrb[30].mxu1 %vm2365_vm13, %v4519_v63  ;;  %v5999_v9 = vpop.permute.xlu1 %5998  ;;  %v6004_v16 = vpop.permute.xlu0 %6003 }
 0x874   : > { %5563 = vmatpush3.bf16.msra.mxu1 %v5562_v31  ;;  %5152 = vmatprep.mubr.msk.f32.mxu1 %vm6058_vm12, %v6049_v20  ;;  %v6001_v10 = vunpack.i.h.bf16 %v5999_v9  ;;  %v6000_v60 = vunpack.i.l.bf16 %v5999_v9  ;;  %v6006_v17 = vunpack.i.h.bf16 %v6004_v16  ;;  %v6005_v18 = vunpack.i.l.bf16 %v6004_v16  ;;  %v4540_v31 = vld [vmem:[%s6773_s6 + $0x2c] sm:$0xf] }
 0x875   : > { %5564 = vmatprep.subr.bf16.mxu1 %v6057_v34 }
 0x876   : > { %v5577_v11 = vpack.c.bf16 %v6001_v10, %v6000_v60  ;;  %v5580_v4 = vpack.c.bf16 %v6006_v17, %v6005_v18 }
 0x877   : > { %v6009_v19 = vpop.permute.xlu1 %6008  ;;  %v6014_v25 = vpop.permute.xlu0 %6013 }
 0x878   : > { %v6011_v14 = vunpack.i.h.bf16 %v6009_v19  ;;  %v6010_v22 = vunpack.i.l.bf16 %v6009_v19  ;;  %v6016_v12 = vunpack.i.h.bf16 %v6014_v25  ;;  %v6015_v26 = vunpack.i.l.bf16 %v6014_v25 }
 0x87a   : > { %v5586_v24 = vpack.c.bf16 %v6011_v14, %v6010_v22  ;;  %v5589_v27 = vpack.c.bf16 %v6016_v12, %v6015_v26  ;;  %v6061_v14 = vmov 1.0  }
 0x87b   : > { %5153 = vmatmul.mubr.msk.f32.vlgmr.msra.gmra.mrb[30].mxu1 %vm2365_vm13, %v2728_v57  ;;  %v6019_v28 = vpop.permute.xlu1 %6018  ;;  %v6024_v32 = vpop.permute.xlu0 %6023 }
 0x87c   : > { %5566 = vmatpush3.bf16.msra.mxu1 %v5565_v58  ;;  %5159 = vmatprep.mubr.msk.f32.mxu1 %vm6058_vm12, %v6049_v20  ;;  %v6021_v56 = vunpack.i.h.bf16 %v6019_v28  ;;  %v6020_v29 = vunpack.i.l.bf16 %v6019_v28  ;;  %v6026_v33 = vunpack.i.h.bf16 %v6024_v32  ;;  %v6060_v58 = vmov 0.25  }
 0x87d   : > { %5567 = vmatprep.subr.bf16.mxu1 %v6057_v34 }
 0x87e   : > { %v5592_v30 = vpack.c.bf16 %v6021_v56, %v6020_v29 }
 0x87f   : > { %v6029_v39 = vpop.permute.xlu1 %6028 }
 0x880   : > { %v6031_v38 = vunpack.i.h.bf16 %v6029_v39 }
 0x883   : > { %5160 = vmatmul.mubr.msk.f32.vlgmr.msra.gmra.mrb[30].mxu1 %vm2365_vm13, %v4522_v2 }
 0x884   : > { %5569 = vmatpush3.bf16.msra.mxu1 %v5568_v3  ;;  %5166 = vmatprep.mubr.msk.f32.mxu1 %vm6058_vm12, %v6049_v20 }
 0x885   : > { %5570 = vmatprep.subr.bf16.mxu1 %v6057_v34 }
 0x88b   : > { %5167 = vmatmul.mubr.msk.f32.vlgmr.msra.gmra.mrb[30].mxu1 %vm2365_vm13, %v4524_v5 }
 0x88c   : > { %5572 = vmatpush3.bf16.msra.mxu1 %v5571_v35  ;;  %5173 = vmatprep.mubr.msk.f32.mxu1 %vm6058_vm12, %v6049_v20  ;;  %v6025_v35 = vunpack.i.l.bf16 %v6024_v32 }
 0x88d   : > { %5573 = vmatprep.subr.bf16.mxu1 %v6057_v34 }
 0x88e   : > { %v5598_v37 = vpack.c.bf16 %v6026_v33, %v6025_v35 }
 0x893   : > { %5174 = vmatmul.mubr.msk.f32.vlgmr.msra.gmra.mrb[30].mxu1 %vm2365_vm13, %v4526_v53 }
 0x894   : > { %5575 = vmatpush3.bf16.msra.mxu1 %v5574_v8  ;;  %5180 = vmatprep.mubr.msk.f32.mxu1 %vm6058_vm12, %v6049_v20 }
 0x895   : > { %5576 = vmatprep.subr.bf16.mxu1 %v6057_v34 }
 0x89b   : > { %5181 = vmatmul.mubr.msk.f32.vlgmr.msra.gmra.mrb[30].mxu1 %vm2365_vm13, %v4528_v61 }
 0x89c   : > { %5578 = vmatpush3.bf16.msra.mxu1 %v5577_v11  ;;  %5187 = vmatprep.mubr.msk.f32.mxu1 %vm6058_vm12, %v6049_v20 }
 0x89d   : > { %5579 = vmatprep.subr.bf16.mxu1 %v6057_v34 }
 0x8a3   : > { %5188 = vmatmul.mubr.msk.f32.vlgmr.msra.gmra.mrb[30].mxu1 %vm2365_vm13, %v4530_v50  ;;  %v4216_v50 = vld [vmem:[%s6774_s7 + $0xa] sm:$0xf] }
 0x8a4   : > { %5581 = vmatpush3.bf16.msra.mxu1 %v5580_v4  ;;  %5194 = vmatprep.mubr.msk.f32.mxu1 %vm6058_vm12, %v6049_v20 }
 0x8a5   : > { %5582 = vmatprep.subr.bf16.mxu1 %v6057_v34 }
 0x8ab   : > { %5195 = vmatmul.mubr.msk.f32.vlgmr.msra.gmra.mrb[30].mxu1 %vm2365_vm13, %v4532_v6 }
 0x8ac   : > { %5584 = vmatpush3.bf16.msra.mxu1 %v5583_v40  ;;  %5201 = vmatprep.mubr.msk.f32.mxu1 %vm6058_vm12, %v6049_v20  ;;  %v6030_v40 = vunpack.i.l.bf16 %v6029_v39 }
 0x8ad   : > { %5585 = vmatprep.subr.bf16.mxu1 %v6057_v34 }
 0x8ae   : > { %v5601_v42 = vpack.c.bf16 %v6031_v38, %v6030_v40 }
 0x8b3   : > { %5202 = vmatmul.mubr.msk.f32.vlgmr.msra.gmra.mrb[30].mxu1 %vm2365_vm13, %v4534_v23 }
 0x8b4   : > { %5587 = vmatpush3.bf16.msra.mxu1 %v5586_v24  ;;  %5208 = vmatprep.mubr.msk.f32.mxu1 %vm6058_vm12, %v6049_v20  ;;  %v4217_v24 = vld [vmem:[%s6774_s7 + $0xe] sm:$0x1] }
 0x8b5   : > { %5588 = vmatprep.subr.bf16.mxu1 %v6057_v34 }
 0x8bb   : > { %5209 = vmatmul.mubr.msk.f32.vlgmr.msra.gmra.mrb[30].mxu1 %vm2365_vm13, %v4536_v13 }
 0x8bc   : > { %5590 = vmatpush3.bf16.msra.mxu1 %v5589_v27  ;;  %5215 = vmatprep.mubr.msk.f32.mxu1 %vm6058_vm12, %v6049_v20 }
 0x8bd   : > { %5591 = vmatprep.subr.bf16.mxu1 %v6057_v34 }
 0x8c3   : > { %5216 = vmatmul.mubr.msk.f32.vlgmr.msra.gmra.mrb[30].mxu1 %vm2365_vm13, %v4538_v21 }
 0x8c4   : > { %5593 = vmatpush3.bf16.msra.mxu1 %v5592_v30  ;;  %5222 = vmatprep.mubr.msk.f32.mxu1 %vm6058_vm12, %v6049_v20 }
 0x8c5   : > { %5594 = vmatprep.subr.bf16.mxu1 %v6057_v34 }
 0x8cb   : > { %5223 = vmatmul.mubr.msk.f32.vlgmr.msra.gmra.mrb[30].mxu1 %vm2365_vm13, %v4540_v31 }
 0x8cc   : > { %5596 = vmatpush3.bf16.msra.mxu1 %v5595_v43  ;;  %5229 = vmatprep.mubr.msk.f32.mxu1 %vm6058_vm12, %v6049_v20  ;;  %v6034_v43 = vpop.permute.xlu0 %6033 }
 0x8cd   : > { %5597 = vmatprep.subr.bf16.mxu1 %v6057_v34  ;;  %v6036_v44 = vunpack.i.h.bf16 %v6034_v43  ;;  %v6035_v45 = vunpack.i.l.bf16 %v6034_v43 }
 0x8cf   : > { %v5604_v47 = vpack.c.bf16 %v6036_v44, %v6035_v45 }
 0x8d3   : > { %5230 = vmatmul.mubr.msk.f32.vlgmr.msra.gmra.mrb[30].mxu1 %vm2365_vm13, %v4542_v36 }
 0x8d4   : > { %5599 = vmatpush3.bf16.msra.mxu1 %v5598_v37  ;;  %5236 = vmatprep.mubr.msk.f32.mxu1 %vm6058_vm12, %v6049_v20 }
 0x8d5   : > { %5600 = vmatprep.subr.bf16.mxu1 %v6057_v34 }
 0x8db   : > { %5237 = vmatmul.mubr.msk.f32.vlgmr.msra.gmra.mrb[30].mxu1 %vm2365_vm13, %v4544_v41 }
 0x8dc   : > { %5602 = vmatpush3.bf16.msra.mxu1 %v5601_v42  ;;  %5243 = vmatprep.mubr.msk.f32.mxu1 %vm6058_vm12, %v6049_v20 }
 0x8dd   : > { %5603 = vmatprep.subr.bf16.mxu1 %v6057_v34 }
 0x8e3   : > { %5244 = vmatmul.mubr.msk.f32.vlgmr.msra.gmra.mrb[30].mxu1 %vm2365_vm13, %v4546_v46 }
 0x8e4   : > { %5605 = vmatpush3.bf16.msra.mxu1 %v5604_v47  ;;  %5250 = vmatprep.mubr.msk.f32.mxu1 %vm6058_vm12, %v6049_v20 }
 0x8e5   : > { %5253 = vmatprep.subr.mxu1 %v6049_v20 }
 0x8eb   : > { %5251 = vmatmul.mubr.msk.f32.vlgmr.msra.gmra.mrb[30].mxu1 %vm2365_vm13, %v4548_v48 }
 0x8ec   : > { %5255 = vmatprep.mubr.msk.f32.mxu1 %vm6058_vm12, %v6049_v20 }
 0x9be   : > { %v4016_v63 = vpop.f32.mrb[30].mxu1 }
 0x9bf   : > { %v4022_v51 = vmul.f32 %v4016_v63, %v4016_v63  ;;  %v5252_v54 = vpop.f32.mrb[31].mxu1 }
 0x9c1   : > { %4024 = vrot.lane.b32.xlu1 %v4022_v51, %s6052_s11 }
 0xa33   : > { %v4025_v55 = vpop.permute.xlu1 %4024 }
 0xa34   : > { %v4028_v57 = vsel %vm4027_vm2, %v4016_v63, %v4025_v55 }
 0xa35   : > { %5254 = vmatpush3.msk.msra.mxu1 %vm4033_vm3, %v4028_v57 }
 0xa36   : > { %5256 = vmatmul.mubr.msk.f32.vlgmr.msra.gmra.mrb[32].mxu1 %vm4029_vm4, %v6060_v58  ;;  %5258 = vmatprep.subr.mxu1 %v6049_v20 }
 0xa37   : > { %5260 = vmatprep.mubr.msk.f32.mxu1 %vm6058_vm12, %v6049_v20  ;;  %5259 = vmatpush3.msk.msra.mxu1 %vm2451_vm14, %v4021_v59 }
 0xa38   : > { %5263 = vmatprep.subr.mxu1 %v6049_v20 }
 0xa3a   : > { %5261 = vmatmul.mubr.msk.f32.vlgmr.msra.gmra.mrb[34].mxu1 %vm2447_vm15, %v6531_v49 }
 0xa3b   : > { %5265 = vmatprep.mubr.msk.f32.mxu1 %vm6058_vm12, %v6049_v20 }
 0xb09   : > { %v4103_v62 = vpop.f32.mrb[32].mxu1 }
 0xb0a   : > { %v4107_v1 = vmul.f32 %v4103_v62, %v4103_v62  ;;  %v5257_v2 = vpop.f32.mrb[33].mxu1 }
 0xb0c   : > { %4109 = vrot.lane.b32.xlu0 %v4107_v1, %s6052_s11 }
 0xb0d   : > { %v4182_v52 = vpop.f32.mrb[34].mxu1 }
 0xb0e   : > { %v5262_v0 = vpop.f32.mrb[35].mxu1 }
 0xb7e   : > { %v4110_v3 = vpop.permute.xlu0 %4109 }
 0xb7f   : > { %v4112_v5 = vsub.f32 %v4103_v62, %v4110_v3 }
 0xb81   : > { %v4186_v7 = vadd.f32 1e-05, %v4112_v5 }
 0xb83   : > { %6039 = vrsqrt.f32 %v4186_v7 }
 0xb8d   : > { %v6040_v53 = vpop.eup %6039 }
 0xb8e   : > { %4189 = vrot.lane.b32.xlu1 %v6040_v53, %s6055_s16 }
 0xc00   : > { %v4190_v49 = vpop.permute.xlu1 %4189 }
 0xc01   : > { %v4192_v8 = vmul.f32 %v4190_v49, %v4182_v52 }
 0xc03   : > { %v4193_v9 = vmul.f32 %v4192_v8, %v4103_v62  ;;  %v4202_v10 = vrot.slane %v4192_v8, %v6551_v15 }
 0xc05   : > { %4195 = vrot.lane.b32.xlu0 %v4193_v9, %s6052_s11  ;;  %v4203_v60 = vmul.f32 %v4202_v10, %v4016_v63 }
 0xc77   : > { %v4196_v61 = vpop.permute.xlu0 %4195 }
 0xc78   : > { %v4198_v11 = vsub.f32 %v4182_v52, %v4196_v61 }
 0xc7a   : > { %v4207_v16 = vrot.slane %v4198_v11, %v6551_v15  ;;  %v6062_v15 = vmov 1.0|1.0  }
 0xc7c   : > { %4209 = vrot.lane.b32.xlu1 %v4207_v16, %s6055_s16 }
 0xcee   : > { %v4210_v17 = vpop.permute.xlu1 %4209 }
 0xcef   : > { %v4212_v18 = vadd.f32 %v4210_v17, %v4203_v60 }
 0xcf1   : > { %vm4213_vm5 = vcmp.ge.f32.partialorder %v4212_v18, 0.0  ;;  %v4214_v4 = vmul.f32 0.2, %v4212_v18 }
 0xcf3   : > { %v4215_v6 = vsel %vm4213_vm5, %v4212_v18, %v4214_v4 }
 0xcf4   : > { %v4218_v19 = vmul.f32 %v4216_v50, %v4215_v6 }
 0xcf6   : > { %5264 = vmatpush3.msk.msra.mxu1 %vm4033_vm3, %v4218_v19 }
 0xcf7   : > { %5266 = vmatmul.mubr.msk.f32.vlgmr.msra.gmra.mrb[36].mxu1 %vm4029_vm4, %v6061_v14  ;;  %5606 = vmatprep.subr.bf16.mxu1 %v6057_v34 }
 0xcf8   : > { %5607 = vmatpush3.bf16.msra.mxu1 %v6062_v15  ;;  %5276 = vmatprep.mubr.msk.f32.mxu1 %vm6058_vm12, %v6049_v20 }
 0xcf9   : > { %5608 = vmatprep.subr.bf16.mxu1 %v6057_v34 }
 0xcfc   : > { %5609 = vmatpush3.bf16.msra.mxu1 %v6062_v15 }
 0xdca   : > { %v4291_v22 = vpop.f32.mrb[36].mxu1 }
 0xdcb   : > { %v5267_v23 = vpop.f32.mrb[37].mxu1  ;;  %5277 = vmatmul.mubr.msk.f32.vlgmr.msra.gmra.mrb[38].mxu1 %vm4027_vm2, %v4291_v22 }
 0xe9e   : > { %v4364_v25 = vpop.f32.mrb[38].mxu1 }
 0xe9f   : > { %v4365_v12 = vadd.f32 %v4364_v25, %v4217_v24  ;;  %v5278_v26 = vpop.f32.mrb[39].mxu1 }
 0xea1   : > { %4369 = vst.msk [vmem:[%s315_s9] sm:$0x1] %vm4368_vm6, %v4365_v12 }
 0xea2 PF: > { %s18_s27 = sadd.s32 1, %s6047_s27  }
 0xea3   : > { %p15_p4 = scmp.ge.s32.totalorder %s18_s27, 4  }
 0xea5   :  { %17 = sbr.rel (!%p15_p4) target bundleno = 1 (0x1), region = 115 }

</bundles_post_ra>
